<compile_context>
chip_gen: v7x
topology: tpu7x:2x2x1
jax: 0.10.0
libtpu: 0.0.40
codegen_flags: <defaults>
</compile_context>

<pallas_src>
import numpy as np
import jax
import jax.numpy as jnp
from jax import lax
from jax.experimental import pallas as pl
from jax.experimental.pallas import tpu as pltpu

# ----------------- configuration (small, consistent with the module) -----------------
N_QUBITS = 7                 # total qubits of rho = kron(m, g)
DIM_A = 4                    # qubits kept after the partial trace
DIM_B = N_QUBITS - DIM_A     # qubits traced out (the leading ones)
DM = 8                       # molecular density matrix dim (3 qubits)
DG = 16                      # gene density matrix dim      (4 qubits)
DIM = 2 ** N_QUBITS          # 128
DA = 2 ** DIM_A              # 16
DB = 2 ** DIM_B              # 8
BATCH = 2
assert DM * DG == DIM and DA * DB == DIM

WIDE = 2 * BATCH * DIM       # 512  : columns of Rc = [Rr_0|Ri_0|Rr_1|Ri_1]
K_EP = 2 * DB * 2 * DIM      # 4096 : contraction length of the fused epilogue

# ----------------- circuit-unitary construction (plain NumPy glue) -----------------
I2 = np.eye(2, dtype=np.complex128)
X = np.array([[0, 1], [1, 0]], dtype=np.complex128)
P0 = np.array([[1, 0], [0, 0]], dtype=np.complex128)
P1 = np.array([[0, 0], [0, 1]], dtype=np.complex128)


def rx(t):
    c, s = np.cos(t / 2), np.sin(t / 2)
    return np.array([[c, -1j * s], [-1j * s, c]])


def ry(t):
    c, s = np.cos(t / 2), np.sin(t / 2)
    return np.array([[c, -s], [s, c]])


def rz(t):
    return np.array([[np.exp(-1j * t / 2), 0], [0, np.exp(1j * t / 2)]])


def embed(n, ops):
    """Full n-qubit operator with single-qubit ops placed on given wires."""
    U = np.array([[1.0 + 0j]])
    for q in range(n):
        U = np.kron(U, ops.get(q, I2))
    return U


def xyz_layer(n, w):
    # TODO(synk): deepquantum XYZLayer gate ordering is assumed to be
    # Rx(w[3q]) -> Ry(w[3q+1]) -> Rz(w[3q+2]) per wire; verify against deepquantum.
    U = np.eye(2 ** n, dtype=np.complex128)
    for q in range(n):
        g = rz(w[3 * q + 2]) @ ry(w[3 * q + 1]) @ rx(w[3 * q])
        U = embed(n, {q: g}) @ U
    return U


def ring_of_cnot(n):
    U = np.eye(2 ** n, dtype=np.complex128)
    for c in range(n):
        t = (c + 1) % n
        cn = embed(n, {c: P0}) + embed(n, {c: P1, t: X})
        U = cn @ U
    return U


def circuit_unitary(n, w):
    """QuDe circuit: XYZ, ring, XYZ, ring, XYZ, ring, XYZ, ring, XYZ."""
    U = np.eye(2 ** n, dtype=np.complex128)
    for layer in range(5):
        U = xyz_layer(n, w[3 * n * layer: 3 * n * (layer + 1)]) @ U
        if layer < 4:
            U = ring_of_cnot(n) @ U
    return U


# ----------------- Pallas kernel -----------------
def qdecoder_kernel(m_ref, g_ref, e_ref, t_ref, selm_ref, selg_ref,
                    us_ref, ubig_ref, o_ref):
    f32 = jnp.float32
    bf16 = jnp.bfloat16

    def dot(a, b):
        return jnp.dot(a, b, preferred_element_type=f32)

    def dot_t(a, b):  # a @ b.T without materializing a transpose
        return lax.dot_general(a, b, (((1,), (1,)), ((), ())),
                               preferred_element_type=f32)

    # ---- kron(molecular, gene): batch + real/imag folded into columns ----
    # Mcat = [Mr_0|Mr_0|Mr_1|Mr_1 | Mi_0|Mi_0|Mi_1|Mi_1]   (DIM, 2*WIDE)
    # Gcat = [Gr_0|Gi_0|Gr_1|Gi_1 |-Gi_0|Gr_0|-Gi_1|Gr_1]  (DIM, 2*WIDE)
    # Rc   = Mcat_A * Gcat_A + Mcat_B * Gcat_B = [Rr_0|Ri_0|Rr_1|Ri_1]
    m = m_ref[...].astype(bf16)                               # (DM, B*2*DM)
    g = g_ref[...].astype(bf16)                               # (DG, B*2*DG)
    pm = dot(m, selm_ref[...]).astype(bf16)                   # (DM, 2*WIDE) exact copies
    pg = dot(g, selg_ref[...]).astype(bf16)                   # (DG, 2*WIDE)
    Mcat = dot(e_ref[...], pm)                                # (DIM, 2*WIDE) f32
    Gcat = dot(t_ref[...], pg)                                # (DIM, 2*WIDE) f32
    Rc = (Mcat[:, :WIDE] * Gcat[:, :WIDE]
          + Mcat[:, WIDE:] * Gcat[:, WIDE:]).astype(bf16)     # (DIM, WIDE)

    # ---- T = U @ rho for BOTH batches: one 256 x 128 x 512 bf16 MXU matmul ----
    UV = dot(us_ref[...], Rc)                                 # (2*DIM, WIDE) f32
    UVb = UV.astype(bf16)

    # ---- fused (@ U^H) + partial trace + complex recombination ----
    # Regroup UV row-blocks into one lane-dense (B*DA, K_EP) bf16 operand; the
    # +/- recombination and the U^H / trace weights live in the host constant Ubig.
    rows = []
    for b in range(BATCH):
        pieces = [UVb[s * DIM + k * DA: s * DIM + (k + 1) * DA,
                      b * 2 * DIM: (b + 1) * 2 * DIM]
                  for s in range(2) for k in range(DB)]
        rows.append(jnp.concatenate(pieces, axis=1))          # (DA, K_EP)
    L = jnp.concatenate(rows, axis=0)                         # (B*DA, K_EP)

    o_ref[...] = dot_t(L, ubig_ref[...])                      # (B*DA, 2*DA) f32


# ----------------- host-side constants -----------------
def build_constants(U):
    """Kron selectors (batch / real-imag duplication and signs folded in) plus the
    two re-laid-out copies of the circuit unitary."""
    rows = np.arange(DIM)
    E = (rows[:, None] // DG == np.arange(DM)[None, :]).astype(np.float32)    # (128, 8)
    Tsel = (rows[:, None] % DG == np.arange(DG)[None, :]).astype(np.float32)  # (128, 16)
    ET, TT = E.T, Tsel.T

    # Column-expansion selectors producing Mcat / Gcat directly (see kernel comment).
    SelM2 = np.zeros((BATCH * 2 * DM, 2 * WIDE), np.float32)   # (32, 1024)
    SelG2 = np.zeros((BATCH * 2 * DG, 2 * WIDE), np.float32)   # (64, 1024)
    for b in range(BATCH):
        mr = slice((2 * b) * DM, (2 * b + 1) * DM)
        mi = slice((2 * b + 1) * DM, (2 * b + 2) * DM)
        gr = slice((2 * b) * DG, (2 * b + 1) * DG)
        gi = slice((2 * b + 1) * DG, (2 * b + 2) * DG)
        for t in range(2):
            colA = slice((b * 2 + t) * DIM, (b * 2 + t + 1) * DIM)
            colB = slice(WIDE + (b * 2 + t) * DIM, WIDE + (b * 2 + t + 1) * DIM)
            SelM2[mr, colA] = ET                  # MA blocks: Mr_b (duplicated)
            SelM2[mi, colB] = ET                  # MB blocks: Mi_b (duplicated)
            if t == 0:
                SelG2[gr, colA] = TT              # GA t=0: +Gr_b
                SelG2[gi, colB] = -TT             # GB t=0: -Gi_b
            else:
                SelG2[gi, colA] = TT              # GA t=1: +Gi_b
                SelG2[gr, colB] = TT              # GB t=1: +Gr_b

    Ur = np.ascontiguousarray(U.real).astype(np.float32)
    Ui = np.ascontiguousarray(U.imag).astype(np.float32)
    Ustack = np.concatenate([Ur, Ui], axis=0)     # (2*DIM, DIM) = [Ur ; Ui]

    # Fused epilogue weights.  L columns are laid out (s, k, t, c) with
    # s in {Ur-rows, Ui-rows} of UV, t in {Rr, Ri} columns of UV, k the traced block.
    # Output columns: [real j (0..15) | imag j (16..31)].
    Ubig = np.zeros((2 * DA, K_EP), np.float32)   # (32, 4096)
    for s in range(2):
        for k in range(DB):
            Urk = Ur[k * DA:(k + 1) * DA, :]
            Uik = Ui[k * DA:(k + 1) * DA, :]
            wsel = {(0, 0): (Urk, -Uik),          # pairs with Ur@Rr
                    (0, 1): (Uik, Urk),           # pairs with Ur@Ri
                    (1, 0): (Uik, Urk),           # pairs with Ui@Rr
                    (1, 1): (-Urk, Uik)}          # pairs with Ui@Ri
            for t in range(2):
                wr, wi = wsel[(s, t)]
                c0 = s * (DB * 2 * DIM) + k * (2 * DIM) + t * DIM
                Ubig[:DA, c0:c0 + DIM] = wr
                Ubig[DA:, c0:c0 + DIM] = wi

    bf = jnp.bfloat16
    return (jnp.asarray(E, bf), jnp.asarray(Tsel, bf),
            jnp.asarray(SelM2, bf), jnp.asarray(SelG2, bf),
            jnp.asarray(Ustack, bf), jnp.asarray(Ubig, bf))


# ----------------- wrapper -----------------
def q_decoder_pallas(m_all, g_all, E, Tsel, SelM2, SelG2, Ustack, Ubig):
    """Returns (B*DA, 2*DA) f32: rows = batches stacked, cols = [real | imag] of
    partial_trace(U kron(m, g) U^H)."""
    args = (m_all, g_all, E, Tsel, SelM2, SelG2, Ustack, Ubig)
    in_specs = [pl.BlockSpec(a.shape, lambda i: (0, 0)) for a in args]
    out_shape = jax.ShapeDtypeStruct((BATCH * DA, 2 * DA), jnp.float32)
    out_specs = pl.BlockSpec((BATCH * DA, 2 * DA), lambda i: (0, 0))

    flops = 2 * (DM * (BATCH * 2 * DM) * (2 * WIDE)
                 + DG * (BATCH * 2 * DG) * (2 * WIDE)
                 + DIM * DM * (2 * WIDE)
                 + DIM * DG * (2 * WIDE)
                 + (2 * DIM) * DIM * WIDE
                 + (BATCH * DA) * K_EP * (2 * DA))
    bytes_accessed = int(sum(a.size * a.dtype.itemsize for a in args)
                         + BATCH * DA * 2 * DA * 4)

    fn = pl.pallas_call(
        qdecoder_kernel,
        out_shape=out_shape,
        grid=(1,),
        in_specs=in_specs,
        out_specs=out_specs,
        compiler_params=pltpu.CompilerParams(dimension_semantics=("arbitrary",)),
        cost_estimate=pl.CostEstimate(flops=int(flops), transcendentals=0,
                                      bytes_accessed=bytes_accessed),
    )
    return fn(*args)


# ----------------- driver -----------------
if __name__ == "__main__":
    key = jax.random.PRNGKey(0)
    k1, k2, kw = jax.random.split(key, 3)

    def rand_dm(k, d):
        ka, kb = jax.random.split(k)
        a = jax.random.normal(ka, (BATCH, d, d)) + 1j * jax.random.normal(kb, (BATCH, d, d))
        rho = jnp.einsum('bij,bkj->bik', a, jnp.conj(a))
        tr = jnp.trace(rho, axis1=1, axis2=2)[:, None, None]
        return (rho / tr).astype(jnp.complex64)

    molecular = rand_dm(k1, DM)   # (B, 8, 8)  complex density matrices
    gene = rand_dm(k2, DG)        # (B, 16, 16)

    # QuDe weights: uniform(0, 2*pi) * init_std (=1), forward scales by w_mul = sqrt(2/5)
    w_mul = (2 ** 0.5) * (5 ** -0.5)
    w = np.asarray(jax.random.uniform(kw, (15 * N_QUBITS,), minval=0.0,
                                      maxval=2.0 * np.pi), dtype=np.float64) * w_mul
    U = circuit_unitary(N_QUBITS, w)

    consts = build_constants(U)

    # Pack inputs: columns = [re_b0 | im_b0 | re_b1 | im_b1]
    m_np = np.asarray(molecular)
    g_np = np.asarray(gene)
    m_all = np.concatenate([np.concatenate([m_np[b].real, m_np[b].imag], axis=1)
                            for b in range(BATCH)], axis=1).astype(np.float32)   # (8, 32)
    g_all = np.concatenate([np.concatenate([g_np[b].real, g_np[b].imag], axis=1)
                            for b in range(BATCH)], axis=1).astype(np.float32)   # (16, 64)

    out = q_decoder_pallas(jnp.asarray(m_all), jnp.asarray(g_all), *consts)
    jax.block_until_ready(out)
    out_np = np.asarray(out)                                     # (B*DA, 2*DA)
    got = np.stack([out_np[b * DA:(b + 1) * DA, :DA]
                    + 1j * out_np[b * DA:(b + 1) * DA, DA:]
                    for b in range(BATCH)])

    # float64 host reference
    m128 = m_np.astype(np.complex128)
    g128 = g_np.astype(np.complex128)
    rho_ref = np.stack([np.kron(m128[b], g128[b]) for b in range(BATCH)])
    dec = np.einsum('ab,nbc,dc->nad', U, rho_ref, U.conj())
    ref = np.einsum('nkikj->nij', dec.reshape(BATCH, DB, DA, DB, DA))

    # Tolerance sized for bf16 MXU operands (inputs, rho, UV all pass through bf16 once).
    assert np.allclose(got, ref, atol=1e-2, rtol=3e-2), "mismatch vs reference"

    print("KERNEL_OK")
</pallas_src>

<mosaic_0001>
module attributes {stable_mosaic.version = 11 : i64} {
  func.func @qdecoder_kernel(%arg0: i32, %arg1: memref<8x32xf32, #tpu.memory_space<vmem>>, %arg2: memref<16x64xf32, #tpu.memory_space<vmem>>, %arg3: memref<128x8xbf16, #tpu.memory_space<vmem>>, %arg4: memref<128x16xbf16, #tpu.memory_space<vmem>>, %arg5: memref<32x1024xbf16, #tpu.memory_space<vmem>>, %arg6: memref<64x1024xbf16, #tpu.memory_space<vmem>>, %arg7: memref<256x128xbf16, #tpu.memory_space<vmem>>, %arg8: memref<32x4096xbf16, #tpu.memory_space<vmem>>, %arg9: memref<32x32xf32, #tpu.memory_space<vmem>>) attributes {dimension_semantics = [#tpu.dimension_semantics<arbitrary>], iteration_bounds = array<i64: 1>, scalar_prefetch = 0 : i64, scratch_operands = 0 : i64, tpu.core_type = #tpu.core_type<tc>, window_params = [{pipeline_mode = #tpu.pipeline_mode<synchronous>, transform_indices = @transform_0, window_bounds = array<i64: 8, 32>}, {pipeline_mode = #tpu.pipeline_mode<synchronous>, transform_indices = @transform_1, window_bounds = array<i64: 16, 64>}, {pipeline_mode = #tpu.pipeline_mode<synchronous>, transform_indices = @transform_2, window_bounds = array<i64: 128, 8>}, {pipeline_mode = #tpu.pipeline_mode<synchronous>, transform_indices = @transform_3, window_bounds = array<i64: 128, 16>}, {pipeline_mode = #tpu.pipeline_mode<synchronous>, transform_indices = @transform_4, window_bounds = array<i64: 32, 1024>}, {pipeline_mode = #tpu.pipeline_mode<synchronous>, transform_indices = @transform_5, window_bounds = array<i64: 64, 1024>}, {pipeline_mode = #tpu.pipeline_mode<synchronous>, transform_indices = @transform_6, window_bounds = array<i64: 256, 128>}, {pipeline_mode = #tpu.pipeline_mode<synchronous>, transform_indices = @transform_7, window_bounds = array<i64: 32, 4096>}, {pipeline_mode = #tpu.pipeline_mode<synchronous>, transform_indices = @transform_8, window_bounds = array<i64: 32, 32>}]} {
    %c0 = arith.constant 0 : index
    %c0_0 = arith.constant 0 : index
    %0 = vector.load %arg1[%c0, %c0_0] : memref<8x32xf32, #tpu.memory_space<vmem>>, vector<8x32xf32>
    %1 = arith.truncf %0 : vector<8x32xf32> to vector<8x32xbf16>
    %c0_1 = arith.constant 0 : index
    %c0_2 = arith.constant 0 : index
    %2 = vector.load %arg2[%c0_1, %c0_2] : memref<16x64xf32, #tpu.memory_space<vmem>>, vector<16x64xf32>
    %3 = arith.truncf %2 : vector<16x64xf32> to vector<16x64xbf16>
    %c0_3 = arith.constant 0 : index
    %c0_4 = arith.constant 0 : index
    %4 = vector.load %arg5[%c0_3, %c0_4] : memref<32x1024xbf16, #tpu.memory_space<vmem>>, vector<32x1024xbf16>
    %cst = arith.constant dense<0.000000e+00> : vector<8x1024xf32>
    %5 = tpu.matmul %1, %4, %cst {dimension_numbers = #tpu.dot_dimension_numbers<[1], [0], [0], [1], [0, 0, 1, 1], [], []>} : vector<8x32xbf16>, vector<32x1024xbf16>, vector<8x1024xf32> -> vector<8x1024xf32>
    %6 = arith.truncf %5 : vector<8x1024xf32> to vector<8x1024xbf16>
    %c0_5 = arith.constant 0 : index
    %c0_6 = arith.constant 0 : index
    %7 = vector.load %arg6[%c0_5, %c0_6] : memref<64x1024xbf16, #tpu.memory_space<vmem>>, vector<64x1024xbf16>
    %cst_7 = arith.constant dense<0.000000e+00> : vector<16x1024xf32>
    %8 = tpu.matmul %3, %7, %cst_7 {dimension_numbers = #tpu.dot_dimension_numbers<[1], [0], [0], [1], [0, 0, 1, 1], [], []>} : vector<16x64xbf16>, vector<64x1024xbf16>, vector<16x1024xf32> -> vector<16x1024xf32>
    %9 = arith.truncf %8 : vector<16x1024xf32> to vector<16x1024xbf16>
    %c0_8 = arith.constant 0 : index
    %c0_9 = arith.constant 0 : index
    %10 = vector.load %arg3[%c0_8, %c0_9] : memref<128x8xbf16, #tpu.memory_space<vmem>>, vector<128x8xbf16>
    %cst_10 = arith.constant dense<0.000000e+00> : vector<128x1024xf32>
    %11 = tpu.matmul %10, %6, %cst_10 {dimension_numbers = #tpu.dot_dimension_numbers<[1], [0], [0], [1], [0, 0, 1, 1], [], []>} : vector<128x8xbf16>, vector<8x1024xbf16>, vector<128x1024xf32> -> vector<128x1024xf32>
    %c0_11 = arith.constant 0 : index
    %c0_12 = arith.constant 0 : index
    %12 = vector.load %arg4[%c0_11, %c0_12] : memref<128x16xbf16, #tpu.memory_space<vmem>>, vector<128x16xbf16>
    %cst_13 = arith.constant dense<0.000000e+00> : vector<128x1024xf32>
    %13 = tpu.matmul %12, %9, %cst_13 {dimension_numbers = #tpu.dot_dimension_numbers<[1], [0], [0], [1], [0, 0, 1, 1], [], []>} : vector<128x16xbf16>, vector<16x1024xbf16>, vector<128x1024xf32> -> vector<128x1024xf32>
    %14 = vector.extract_strided_slice %11 {offsets = [0, 0], sizes = [128, 512], strides = [1, 1]} : vector<128x1024xf32> to vector<128x512xf32>
    %15 = vector.extract_strided_slice %13 {offsets = [0, 0], sizes = [128, 512], strides = [1, 1]} : vector<128x1024xf32> to vector<128x512xf32>
    %16 = arith.mulf %14, %15 : vector<128x512xf32>
    %17 = vector.extract_strided_slice %11 {offsets = [0, 512], sizes = [128, 512], strides = [1, 1]} : vector<128x1024xf32> to vector<128x512xf32>
    %18 = vector.extract_strided_slice %13 {offsets = [0, 512], sizes = [128, 512], strides = [1, 1]} : vector<128x1024xf32> to vector<128x512xf32>
    %19 = arith.mulf %17, %18 : vector<128x512xf32>
    %20 = arith.addf %16, %19 : vector<128x512xf32>
    %21 = arith.truncf %20 : vector<128x512xf32> to vector<128x512xbf16>
    %c0_14 = arith.constant 0 : index
    %c0_15 = arith.constant 0 : index
    %22 = vector.load %arg7[%c0_14, %c0_15] : memref<256x128xbf16, #tpu.memory_space<vmem>>, vector<256x128xbf16>
    %cst_16 = arith.constant dense<0.000000e+00> : vector<256x512xf32>
    %23 = tpu.matmul %22, %21, %cst_16 {dimension_numbers = #tpu.dot_dimension_numbers<[1], [0], [0], [1], [0, 0, 1, 1], [], []>} : vector<256x128xbf16>, vector<128x512xbf16>, vector<256x512xf32> -> vector<256x512xf32>
    %24 = arith.truncf %23 : vector<256x512xf32> to vector<256x512xbf16>
    %25 = vector.extract_strided_slice %24 {offsets = [0, 0], sizes = [16, 256], strides = [1, 1]} : vector<256x512xbf16> to vector<16x256xbf16>
    %26 = vector.extract_strided_slice %24 {offsets = [16, 0], sizes = [16, 256], strides = [1, 1]} : vector<256x512xbf16> to vector<16x256xbf16>
    %27 = vector.extract_strided_slice %24 {offsets = [32, 0], sizes = [16, 256], strides = [1, 1]} : vector<256x512xbf16> to vector<16x256xbf16>
    %28 = vector.extract_strided_slice %24 {offsets = [48, 0], sizes = [16, 256], strides = [1, 1]} : vector<256x512xbf16> to vector<16x256xbf16>
    %29 = vector.extract_strided_slice %24 {offsets = [64, 0], sizes = [16, 256], strides = [1, 1]} : vector<256x512xbf16> to vector<16x256xbf16>
    %30 = vector.extract_strided_slice %24 {offsets = [80, 0], sizes = [16, 256], strides = [1, 1]} : vector<256x512xbf16> to vector<16x256xbf16>
    %31 = vector.extract_strided_slice %24 {offsets = [96, 0], sizes = [16, 256], strides = [1, 1]} : vector<256x512xbf16> to vector<16x256xbf16>
    %32 = vector.extract_strided_slice %24 {offsets = [112, 0], sizes = [16, 256], strides = [1, 1]} : vector<256x512xbf16> to vector<16x256xbf16>
    %33 = vector.extract_strided_slice %24 {offsets = [128, 0], sizes = [16, 256], strides = [1, 1]} : vector<256x512xbf16> to vector<16x256xbf16>
    %34 = vector.extract_strided_slice %24 {offsets = [144, 0], sizes = [16, 256], strides = [1, 1]} : vector<256x512xbf16> to vector<16x256xbf16>
    %35 = vector.extract_strided_slice %24 {offsets = [160, 0], sizes = [16, 256], strides = [1, 1]} : vector<256x512xbf16> to vector<16x256xbf16>
    %36 = vector.extract_strided_slice %24 {offsets = [176, 0], sizes = [16, 256], strides = [1, 1]} : vector<256x512xbf16> to vector<16x256xbf16>
    %37 = vector.extract_strided_slice %24 {offsets = [192, 0], sizes = [16, 256], strides = [1, 1]} : vector<256x512xbf16> to vector<16x256xbf16>
    %38 = vector.extract_strided_slice %24 {offsets = [208, 0], sizes = [16, 256], strides = [1, 1]} : vector<256x512xbf16> to vector<16x256xbf16>
    %39 = vector.extract_strided_slice %24 {offsets = [224, 0], sizes = [16, 256], strides = [1, 1]} : vector<256x512xbf16> to vector<16x256xbf16>
    %40 = vector.extract_strided_slice %24 {offsets = [240, 0], sizes = [16, 256], strides = [1, 1]} : vector<256x512xbf16> to vector<16x256xbf16>
    %41 = tpu.concatenate %25, %26, %27, %28, %29, %30, %31, %32, %33, %34, %35, %36, %37, %38, %39, %40 in 1 : vector<16x256xbf16>, vector<16x256xbf16>, vector<16x256xbf16>, vector<16x256xbf16>, vector<16x256xbf16>, vector<16x256xbf16>, vector<16x256xbf16>, vector<16x256xbf16>, vector<16x256xbf16>, vector<16x256xbf16>, vector<16x256xbf16>, vector<16x256xbf16>, vector<16x256xbf16>, vector<16x256xbf16>, vector<16x256xbf16>, vector<16x256xbf16> -> vector<16x4096xbf16>
    %42 = vector.extract_strided_slice %24 {offsets = [0, 256], sizes = [16, 256], strides = [1, 1]} : vector<256x512xbf16> to vector<16x256xbf16>
    %43 = vector.extract_strided_slice %24 {offsets = [16, 256], sizes = [16, 256], strides = [1, 1]} : vector<256x512xbf16> to vector<16x256xbf16>
    %44 = vector.extract_strided_slice %24 {offsets = [32, 256], sizes = [16, 256], strides = [1, 1]} : vector<256x512xbf16> to vector<16x256xbf16>
    %45 = vector.extract_strided_slice %24 {offsets = [48, 256], sizes = [16, 256], strides = [1, 1]} : vector<256x512xbf16> to vector<16x256xbf16>
    %46 = vector.extract_strided_slice %24 {offsets = [64, 256], sizes = [16, 256], strides = [1, 1]} : vector<256x512xbf16> to vector<16x256xbf16>
    %47 = vector.extract_strided_slice %24 {offsets = [80, 256], sizes = [16, 256], strides = [1, 1]} : vector<256x512xbf16> to vector<16x256xbf16>
    %48 = vector.extract_strided_slice %24 {offsets = [96, 256], sizes = [16, 256], strides = [1, 1]} : vector<256x512xbf16> to vector<16x256xbf16>
    %49 = vector.extract_strided_slice %24 {offsets = [112, 256], sizes = [16, 256], strides = [1, 1]} : vector<256x512xbf16> to vector<16x256xbf16>
    %50 = vector.extract_strided_slice %24 {offsets = [128, 256], sizes = [16, 256], strides = [1, 1]} : vector<256x512xbf16> to vector<16x256xbf16>
    %51 = vector.extract_strided_slice %24 {offsets = [144, 256], sizes = [16, 256], strides = [1, 1]} : vector<256x512xbf16> to vector<16x256xbf16>
    %52 = vector.extract_strided_slice %24 {offsets = [160, 256], sizes = [16, 256], strides = [1, 1]} : vector<256x512xbf16> to vector<16x256xbf16>
    %53 = vector.extract_strided_slice %24 {offsets = [176, 256], sizes = [16, 256], strides = [1, 1]} : vector<256x512xbf16> to vector<16x256xbf16>
    %54 = vector.extract_strided_slice %24 {offsets = [192, 256], sizes = [16, 256], strides = [1, 1]} : vector<256x512xbf16> to vector<16x256xbf16>
    %55 = vector.extract_strided_slice %24 {offsets = [208, 256], sizes = [16, 256], strides = [1, 1]} : vector<256x512xbf16> to vector<16x256xbf16>
    %56 = vector.extract_strided_slice %24 {offsets = [224, 256], sizes = [16, 256], strides = [1, 1]} : vector<256x512xbf16> to vector<16x256xbf16>
    %57 = vector.extract_strided_slice %24 {offsets = [240, 256], sizes = [16, 256], strides = [1, 1]} : vector<256x512xbf16> to vector<16x256xbf16>
    %58 = tpu.concatenate %42, %43, %44, %45, %46, %47, %48, %49, %50, %51, %52, %53, %54, %55, %56, %57 in 1 : vector<16x256xbf16>, vector<16x256xbf16>, vector<16x256xbf16>, vector<16x256xbf16>, vector<16x256xbf16>, vector<16x256xbf16>, vector<16x256xbf16>, vector<16x256xbf16>, vector<16x256xbf16>, vector<16x256xbf16>, vector<16x256xbf16>, vector<16x256xbf16>, vector<16x256xbf16>, vector<16x256xbf16>, vector<16x256xbf16>, vector<16x256xbf16> -> vector<16x4096xbf16>
    %59 = tpu.concatenate %41, %58 in 0 : vector<16x4096xbf16>, vector<16x4096xbf16> -> vector<32x4096xbf16>
    %c0_17 = arith.constant 0 : index
    %c0_18 = arith.constant 0 : index
    %60 = vector.load %arg8[%c0_17, %c0_18] : memref<32x4096xbf16, #tpu.memory_space<vmem>>, vector<32x4096xbf16>
    %cst_19 = arith.constant dense<0.000000e+00> : vector<32x32xf32>
    %61 = tpu.matmul %59, %60, %cst_19 {dimension_numbers = #tpu.dot_dimension_numbers<[1], [1], [0], [0], [0, 0, 1, 0], [], []>} : vector<32x4096xbf16>, vector<32x4096xbf16>, vector<32x32xf32> -> vector<32x32xf32>
    %c0_20 = arith.constant 0 : index
    %c0_21 = arith.constant 0 : index
    %62 = vector.load %arg9[%c0_20, %c0_21] : memref<32x32xf32, #tpu.memory_space<vmem>>, vector<32x32xf32>
    tpu.vector_store %arg9[%c0_20, %c0_21], %61 {strides = array<i32>} : memref<32x32xf32, #tpu.memory_space<vmem>>, vector<32x32xf32>,
    return
  }
  func.func @transform_0(%arg0: i32) -> (i32, i32) {
    %c0_i32 = arith.constant 0 : i32
    %c0_i32_0 = arith.constant 0 : i32
    %c0_i32_1 = arith.constant 0 : i32
    return %c0_i32, %c0_i32_0 : i32, i32
  }
  func.func @transform_1(%arg0: i32) -> (i32, i32) {
    %c0_i32 = arith.constant 0 : i32
    %c0_i32_0 = arith.constant 0 : i32
    %c0_i32_1 = arith.constant 0 : i32
    return %c0_i32, %c0_i32_0 : i32, i32
  }
  func.func @transform_2(%arg0: i32) -> (i32, i32) {
    %c0_i32 = arith.constant 0 : i32
    %c0_i32_0 = arith.constant 0 : i32
    %c0_i32_1 = arith.constant 0 : i32
    return %c0_i32, %c0_i32_0 : i32, i32
  }
  func.func @transform_3(%arg0: i32) -> (i32, i32) {
    %c0_i32 = arith.constant 0 : i32
    %c0_i32_0 = arith.constant 0 : i32
    %c0_i32_1 = arith.constant 0 : i32
    return %c0_i32, %c0_i32_0 : i32, i32
  }
  func.func @transform_4(%arg0: i32) -> (i32, i32) {
    %c0_i32 = arith.constant 0 : i32
    %c0_i32_0 = arith.constant 0 : i32
    %c0_i32_1 = arith.constant 0 : i32
    return %c0_i32, %c0_i32_0 : i32, i32
  }
  func.func @transform_5(%arg0: i32) -> (i32, i32) {
    %c0_i32 = arith.constant 0 : i32
    %c0_i32_0 = arith.constant 0 : i32
    %c0_i32_1 = arith.constant 0 : i32
    return %c0_i32, %c0_i32_0 : i32, i32
  }
  func.func @transform_6(%arg0: i32) -> (i32, i32) {
    %c0_i32 = arith.constant 0 : i32
    %c0_i32_0 = arith.constant 0 : i32
    %c0_i32_1 = arith.constant 0 : i32
    return %c0_i32, %c0_i32_0 : i32, i32
  }
  func.func @transform_7(%arg0: i32) -> (i32, i32) {
    %c0_i32 = arith.constant 0 : i32
    %c0_i32_0 = arith.constant 0 : i32
    %c0_i32_1 = arith.constant 0 : i32
    return %c0_i32, %c0_i32_0 : i32, i32
  }
  func.func @transform_8(%arg0: i32) -> (i32, i32) {
    %c0_i32 = arith.constant 0 : i32
    %c0_i32_0 = arith.constant 0 : i32
    %c0_i32_1 = arith.constant 0 : i32
    return %c0_i32, %c0_i32_0 : i32, i32
  }
}

</mosaic_0001>

<bundles_post_ra>
// kernel: tpu_custom_call.1
= control target key start
LH: loop header
LB: loop body
LE: loop exit
PB: predicated region body
PF: predicated region fallthrough
CT: control target
= control target key end

     0   :  { %13 = vsyncpa [#allocation3], 0  ;;  %s5919_s0 = inlined_call_operand.vmem [shape: f32[8,32], index: 0, kind: input, shape index: {}]   ;;  %s5920_s1 = inlined_call_operand.vmem [shape: f32[16,64], index: 1, kind: input, shape index: {}]   ;;  %s5921_s2 = inlined_call_operand.vmem [shape: bf16[128,8], index: 2, kind: input, shape index: {}]   ;;  %s5922_s3 = inlined_call_operand.vmem [shape: bf16[128,16], index: 3, kind: input, shape index: {}]   ;;  %s5923_s4 = inlined_call_operand.vmem [shape: bf16[32,1024], index: 4, kind: input, shape index: {}]   ;;  %s5924_s5 = inlined_call_operand.hbm [shape: bf16[64,1024], index: 5, kind: input, shape index: {}]   ;;  %s5925_s6 = inlined_call_operand.hbm [shape: bf16[256,128], index: 6, kind: input, shape index: {}]   ;;  %s5926_s7 = inlined_call_operand.hbm [shape: bf16[32,4096], index: 7, kind: input, shape index: {}]   ;;  %s5927_s8 = inlined_call_operand.hbm [shape: f32[32,32], index: 8, kind: output, shape index: {}]  }
   0x1   :  { %14 = vsyncpa [#allocation6], 0 }
   0x2   :  { %15 = vsyncpa [#allocation4], 0  ;;  %s4286_s27 = smov [#allocation5]   ;;  %s4192_s9 = scalar_lea.hbm %s5925_s6, 2048 }
   0x3   :  { %s43_s28 = sshll.u32 %s4286_s27, 4  ;;  %p4193_p0 = scmp.ne.s32.totalorder %s5925_s6, %s4192_s9  ;;  %s44_s28 = int_to_ptr.vmem [resolvable:$true] %s43_s28 }
   0x4   :  { %p4196_p1 = scmp.lt.u32.totalorder %s4192_s9, %s5925_s6 }
   0x6   :  { %p4198_p2 = pnand %p4196_p1, %p4193_p0 }
   0x8   :  { %4201 = shalt.err (!%p4198_p2)
}
   0x9   :  { %s4202_s14 = scalar_lea.vmem %s44_s28, 2048  ;;  %p4207_p4 = scmp.lt.s32.totalorder %s44_s28, %s44_s28 }
   0xa   :  { %p4203_p3 = scmp.ne.s32.totalorder %s44_s28, %s4202_s14  ;;  %p4208_p5 = scmp.lt.s32.totalorder %s4202_s14, %s4202_s14 }
   0xc   :  { %p4209_p6 = por %p4208_p5, %p4207_p4 }
   0xe   :  { %p4210_p7 = pnand %p4209_p6, %p4203_p3 }
  0x10   :  { %4213 = shalt.err (!%p4210_p7)
}
  0x11   :  { %s4287_s15 = smov 64   ;;  %s4288_s16 = smov 4  }
  0x12   :  { %49 = dma.hbm_to_vmem [thread:$0]  %s5925_s6, 2048, %s44_s28, [#allocation6], %s4287_s15, %s4287_s15, %s4288_s16  }
  0x13   :  { %s4289_s19 = smov [#allocation2]   ;;  %s4214_s23 = scalar_lea.hbm %s5924_s5, 4096 }
  0x14   :  { %s31_s20 = sshll.u32 %s4289_s19, 4  ;;  %p4215_p8 = scmp.ne.s32.totalorder %s5924_s5, %s4214_s23  ;;  %s32_s20 = int_to_ptr.vmem [resolvable:$true] %s31_s20 }
  0x15   :  { %p4218_p9 = scmp.lt.u32.totalorder %s4214_s23, %s5924_s5 }
  0x17   :  { %p4220_p10 = pnand %p4218_p9, %p4215_p8 }
  0x19   :  { %4223 = shalt.err (!%p4220_p10)
}
  0x1a   :  { %s4224_s29 = scalar_lea.vmem %s32_s20, 4096  ;;  %p4229_p12 = scmp.lt.s32.totalorder %s32_s20, %s32_s20 }
  0x1b   :  { %p4225_p11 = scmp.ne.s32.totalorder %s32_s20, %s4224_s29  ;;  %p4230_p13 = scmp.lt.s32.totalorder %s4224_s29, %s4224_s29 }
  0x1d   :  { %p4231_p0 = por %p4230_p13, %p4229_p12 }
  0x1f   :  { %p4232_p1 = pnand %p4231_p0, %p4225_p11 }
  0x21   :  { %4235 = shalt.err (!%p4232_p1)
}
  0x22   :  { %s4290_s6 = smov 512   ;;  %s4291_s28 = smov 32  }
  0x23   :  { %37 = dma.hbm_to_vmem [thread:$0]  %s5924_s5, 4096, %s32_s20, [#allocation3], %s4290_s6, %s4290_s6, %s4291_s28  }
  0x24   :  { %s4292_s10 = smov [#allocation7]   ;;  %s4236_s14 = scalar_lea.hbm %s5926_s7, 8192 }
  0x25   :  { %s55_s11 = sshll.u32 %s4292_s10, 4  ;;  %p4237_p2 = scmp.ne.s32.totalorder %s5926_s7, %s4236_s14  ;;  %s56_s11 = int_to_ptr.vmem [resolvable:$true] %s55_s11 }
  0x26   :  { %p4240_p3 = scmp.lt.u32.totalorder %s4236_s14, %s5926_s7 }
  0x28   :  { %p4242_p4 = pnand %p4240_p3, %p4237_p2 }
  0x2a   :  { %4245 = shalt.err (!%p4242_p4)
}
  0x2b   :  { %s4246_s19 = scalar_lea.vmem %s56_s11, 8192  ;;  %p4251_p6 = scmp.lt.s32.totalorder %s56_s11, %s56_s11 }
  0x2c   :  { %p4247_p5 = scmp.ne.s32.totalorder %s56_s11, %s4246_s19  ;;  %p4252_p7 = scmp.lt.s32.totalorder %s4246_s19, %s4246_s19 }
  0x2e   :  { %p4253_p8 = por %p4252_p7, %p4251_p6 }
  0x30   :  { %p4254_p9 = pnand %p4253_p8, %p4247_p5 }
  0x32   :  { %4257 = shalt.err (!%p4254_p9)
}
  0x33   :  { %s4293_s5 = smov 2048   ;;  %s4294_s20 = smov 128  }
  0x34   :  { %61 = dma.hbm_to_vmem [thread:$0]  %s5926_s7, 8192, %s56_s11, [#allocation6], %s4293_s5, %s4293_s5, %s4294_s20  }
  0x35   :  { %4280 = dma.done.wait [#allocation3], 4096  }
  0x36   :  { %4281 = vsyncadd [#allocation3], 4294963200 }
  0x37   :  { %4282 = dma.done.wait [#allocation6], 10240  }
  0x38   :  { %4283 = vsyncadd [#allocation6], 4294957056  ;;  %v5928_v0 = vmov 0   ;;  %v77_v1 = vld [vmem:[%s5923_s4] sm:$0xff]  ;;  %v78_v3 = vld [vmem:[%s5923_s4 + $0x8] sm:$0xff]  ;;  %vm173_vm0 = vcmask 261120  }
  0x39   :  { %209 = vmatprep.mubr.bf16.mxu0 %v5928_v0  ;;  %250 = vmatprep.mubr.bf16.mxu1 %v5928_v0  ;;  %v81_v2 = vld [vmem:[%s5923_s4 + $0x20] sm:$0xff]  ;;  %v82_v5 = vld [vmem:[%s5923_s4 + $0x28] sm:$0xff]  ;;  %v79_v15 = vld [vmem:[%s5923_s4 + $0x10] sm:$0xff]  ;;  %vm541_vm1 = vcmask 523264   ;;  %vm806_vm2 = vcmask 1043456   ;;  %vm781_vm3 = vcmask 64512  }
  0x3a   :  { %v3809_v4 = vcombine.high %v77_v1, %v81_v2  ;;  %v3808_v6 = vcombine.low %v77_v1, %v81_v2  ;;  %v85_v7 = vld [vmem:[%s5923_s4 + $0x40] sm:$0xff]  ;;  %v3811_v9 = vcombine.high %v78_v3, %v82_v5  ;;  %v3810_v10 = vcombine.low %v78_v3, %v82_v5  ;;  %v86_v12 = vld [vmem:[%s5923_s4 + $0x48] sm:$0xff]  ;;  %v83_v16 = vld [vmem:[%s5923_s4 + $0x30] sm:$0xff] }
  0x3b   :  { %v89_v8 = vld [vmem:[%s5923_s4 + $0x60] sm:$0xff]  ;;  %v90_v13 = vld [vmem:[%s5923_s4 + $0x68] sm:$0xff]  ;;  %v3813_v20 = vcombine.high %v79_v15, %v83_v16  ;;  %v80_v21 = vld [vmem:[%s5923_s4 + $0x18] sm:$0xff]  ;;  %v3812_v27 = vcombine.low %v79_v15, %v83_v16  ;;  %vm1339_vm4 = vcmask 130048  }
  0x3c   :  { %v3817_v11 = vcombine.high %v85_v7, %v89_v8  ;;  %177 = vmatprep.subr.bf16.mxu0 %v3809_v4  ;;  %v3819_v14 = vcombine.high %v86_v12, %v90_v13  ;;  %218 = vmatprep.subr.bf16.mxu1 %v3811_v9  ;;  %v3816_v17 = vcombine.low %v85_v7, %v89_v8  ;;  %v72_v18 = vld [vmem:[%s5919_s0] sm:$0xff]  ;;  %v87_v22 = vld [vmem:[%s5923_s4 + $0x50] sm:$0xff]  ;;  %v84_v24 = vld [vmem:[%s5923_s4 + $0x38] sm:$0xff] }
  0x3d   :  { %178 = vmatpush1.bf16.msra.mxu0 %v3808_v6  ;;  %219 = vmatpush1.bf16.msra.mxu1 %v3810_v10  ;;  %v3818_v19 = vcombine.low %v86_v12, %v90_v13  ;;  %v91_v23 = vld [vmem:[%s5923_s4 + $0x70] sm:$0xff]  ;;  %v73_v25 = vpack.c.bf16 %v72_v18, %v72_v18  ;;  %v3815_v26 = vcombine.high %v80_v21, %v84_v24  ;;  %v88_v28 = vld [vmem:[%s5923_s4 + $0x58] sm:$0xff]  ;;  %v349_v31 = vld [vmem:[#allocation2] sm:$0xff] }
  0x3e   :  { %179 = vmatprep.subr.bf16.mxu0 %v3817_v11  ;;  %220 = vmatprep.subr.bf16.mxu1 %v3819_v14  ;;  %v92_v29 = vld [vmem:[%s5923_s4 + $0x78] sm:$0xff]  ;;  %v3821_v30 = vcombine.high %v87_v22, %v91_v23  ;;  %v353_v32 = vld [vmem:[#allocation2 + $0x20] sm:$0xff]  ;;  %v3814_v33 = vcombine.low %v80_v21, %v84_v24  ;;  %v3820_v35 = vcombine.low %v87_v22, %v91_v23  ;;  %v350_v36 = vld [vmem:[#allocation2 + $0x8] sm:$0xff] }
  0x3f   :  { %v3823_v34 = vcombine.high %v88_v28, %v92_v29  ;;  %v354_v37 = vld [vmem:[#allocation2 + $0x28] sm:$0xff]  ;;  %v3829_v38 = vcombine.high %v349_v31, %v353_v32  ;;  %v357_v39 = vld [vmem:[#allocation2 + $0x40] sm:$0xff]  ;;  %v3822_v41 = vcombine.low %v88_v28, %v92_v29  ;;  %v3828_v43 = vcombine.low %v349_v31, %v353_v32  ;;  %v351_v62 = vld [vmem:[#allocation2 + $0x10] sm:$0xff] }
  0x40   :  { %v361_v40 = vld [vmem:[#allocation2 + $0x60] sm:$0xff]  ;;  %v3831_v42 = vcombine.high %v350_v36, %v354_v37  ;;  %v358_v46 = vld [vmem:[#allocation2 + $0x48] sm:$0xff]  ;;  %v3830_v49 = vcombine.low %v350_v36, %v354_v37  ;;  %v355_v63 = vld [vmem:[#allocation2 + $0x30] sm:$0xff] }
  0x41   :  { %180 = vmatpush1.bf16.msra.mxu0 %v3816_v17  ;;  %221 = vmatpush1.bf16.msra.mxu1 %v3818_v19  ;;  %v365_v44 = vld [vmem:[#allocation2 + $0x80] sm:$0xff]  ;;  %v362_v47 = vld [vmem:[#allocation2 + $0x68] sm:$0xff]  ;;  %v3837_v48 = vcombine.high %v357_v39, %v361_v40  ;;  %v3836_v53 = vcombine.low %v357_v39, %v361_v40  ;;  %v352_v5 = vld [vmem:[#allocation2 + $0x18] sm:$0xff]  ;;  %v3833_v11 = vcombine.high %v351_v62, %v355_v63 }
  0x42   :  { %259 = vmatprep.subr.bf16.mxu0 %v3813_v20  ;;  %300 = vmatprep.subr.bf16.mxu1 %v3815_v26  ;;  %v369_v45 = vld [vmem:[#allocation2 + $0xa0] sm:$0xff]  ;;  %v366_v50 = vld [vmem:[#allocation2 + $0x88] sm:$0xff]  ;;  %v3839_v52 = vcombine.high %v358_v46, %v362_v47  ;;  %v3838_v57 = vcombine.low %v358_v46, %v362_v47  ;;  %v356_v6 = vld [vmem:[#allocation2 + $0x38] sm:$0xff]  ;;  %v3832_v17 = vcombine.low %v351_v62, %v355_v63 }
  0x43   :  { %v370_v51 = vld [vmem:[#allocation2 + $0xa8] sm:$0xff]  ;;  %v373_v54 = vld [vmem:[#allocation2 + $0xc0] sm:$0xff]  ;;  %v3845_v56 = vcombine.high %v365_v44, %v369_v45  ;;  %v3844_v61 = vcombine.low %v365_v44, %v369_v45  ;;  %v359_v9 = vld [vmem:[#allocation2 + $0x50] sm:$0xff]  ;;  %v3835_v16 = vcombine.high %v352_v5, %v356_v6  ;;  %v3834_v21 = vcombine.low %v352_v5, %v356_v6 }
  0x44   :  { %3824 = vmatmul.mubr.msk.bf16.vlgmr.msra.gmra.mrb[0].mxu0 %vm173_vm0, %v73_v25  ;;  %3825 = vmatmul.mubr.msk.bf16.vlgmr.msra.gmra.mrb[0].mxu1 %vm173_vm0, %v73_v25  ;;  %v377_v55 = vld [vmem:[#allocation2 + $0xe0] sm:$0xff]  ;;  %v374_v58 = vld [vmem:[#allocation2 + $0xc8] sm:$0xff]  ;;  %v3847_v60 = vcombine.high %v366_v50, %v370_v51  ;;  %v3846_v4 = vcombine.low %v366_v50, %v370_v51  ;;  %v363_v10 = vld [vmem:[#allocation2 + $0x70] sm:$0xff] }
  0x45   :  { %260 = vmatpush1.bf16.msra.mxu0 %v3812_v27  ;;  %291 = vmatprep.mubr.bf16.mxu0 %v5928_v0  ;;  %v378_v59 = vld [vmem:[#allocation2 + $0xe8] sm:$0xff]  ;;  %v3853_v1 = vcombine.high %v373_v54, %v377_v55  ;;  %v74_v2 = vld [vmem:[%s5920_s1] sm:$0xff]  ;;  %v3852_v8 = vcombine.low %v373_v54, %v377_v55  ;;  %v360_v13 = vld [vmem:[#allocation2 + $0x58] sm:$0xff]  ;;  %v3841_v20 = vcombine.high %v359_v9, %v363_v10 }
  0x46   :  { %261 = vmatprep.subr.bf16.mxu0 %v3821_v30  ;;  %301 = vmatpush1.bf16.msra.mxu1 %v3814_v33  ;;  %v75_v3 = vld [vmem:[%s5920_s1 + $0x8] sm:$0xff]  ;;  %v3855_v7 = vcombine.high %v374_v58, %v378_v59  ;;  %v3854_v12 = vcombine.low %v374_v58, %v378_v59  ;;  %v364_v14 = vld [vmem:[#allocation2 + $0x78] sm:$0xff]  ;;  %v367_v18 = vld [vmem:[#allocation2 + $0x90] sm:$0xff] }
  0x47   :  { %332 = vmatprep.mubr.bf16.mxu1 %v5928_v0  ;;  %302 = vmatprep.subr.bf16.mxu1 %v3823_v34  ;;  %v76_v15 = vpack.c.bf16 %v75_v3, %v74_v2  ;;  %v371_v19 = vld [vmem:[#allocation2 + $0xb0] sm:$0xff]  ;;  %v368_v22 = vld [vmem:[#allocation2 + $0x98] sm:$0xff]  ;;  %v3843_v24 = vcombine.high %v360_v13, %v364_v14  ;;  %v3842_v29 = vcombine.low %v360_v13, %v364_v14 }
  0x48   :  { %v372_v23 = vld [vmem:[#allocation2 + $0xb8] sm:$0xff]  ;;  %v3849_v26 = vcombine.high %v367_v18, %v371_v19  ;;  %v375_v27 = vld [vmem:[#allocation2 + $0xd0] sm:$0xff]  ;;  %v3848_v31 = vcombine.low %v367_v18, %v371_v19 }
  0x49   :  { %262 = vmatpush1.bf16.msra.mxu0 %v3820_v35  ;;  %v379_v28 = vld [vmem:[#allocation2 + $0xf0] sm:$0xff]  ;;  %v3851_v30 = vcombine.high %v368_v22, %v372_v23  ;;  %v376_v32 = vld [vmem:[#allocation2 + $0xd8] sm:$0xff]  ;;  %v3850_v35 = vcombine.low %v368_v22, %v372_v23 }
  0x4a   :  { %545 = vmatprep.subr.bf16.mxu0 %v3829_v38  ;;  %303 = vmatpush1.bf16.msra.mxu1 %v3822_v41  ;;  %v380_v33 = vld [vmem:[#allocation2 + $0xf8] sm:$0xff]  ;;  %v3857_v34 = vcombine.high %v375_v27, %v379_v28  ;;  %v3856_v37 = vcombine.low %v375_v27, %v379_v28  ;;  %v4488_v6 = vld [vmem:[%s5921_s2 + $0x10] sm:$0xff]  }
  0x4b   :  { %588 = vmatprep.subr.bf16.mxu1 %v3831_v42  ;;  %v3859_v36 = vcombine.high %v376_v32, %v380_v33  ;;  %v3858_v38 = vcombine.low %v376_v32, %v380_v33  ;;  %v4163_v14 = vld [vmem:[%s5921_s2 + $0x18] sm:$0xff]   ;;  %v4166_v28 = vld [vmem:[%s5921_s2 + $0x30] sm:$0xff]  }
  0x4c   :  { %3826 = vmatmul.mubr.msk.bf16.vlgmr.msra.gmra.mrb[4].mxu0 %vm173_vm0, %v73_v25  ;;  %v4167_v32 = vld [vmem:[%s5921_s2 + $0x38] sm:$0xff]  }
  0x4d   :  { %546 = vmatpush1.bf16.msra.mxu0 %v3828_v43  ;;  %577 = vmatprep.mubr.bf16.mxu0 %v5928_v0 }
  0x4e   :  { %547 = vmatprep.subr.bf16.mxu0 %v3837_v48  ;;  %3827 = vmatmul.mubr.msk.bf16.vlgmr.msra.gmra.mrb[4].mxu1 %vm173_vm0, %v73_v25  ;;  %v3840_v25 = vcombine.low %v359_v9, %v363_v10 }
  0x4f   :  { %589 = vmatpush1.bf16.msra.mxu1 %v3830_v49  ;;  %620 = vmatprep.mubr.bf16.mxu1 %v5928_v0 }
  0x50   :  { %590 = vmatprep.subr.bf16.mxu1 %v3839_v52  ;;  %v4461_v52 = vld [vmem:[%s5921_s2] sm:$0xff]  }
  0x51   :  { %548 = vmatpush1.bf16.msra.mxu0 %v3836_v53 }
  0x52   :  { %549 = vmatprep.subr.bf16.mxu0 %v3845_v56 }
  0x53   :  { %591 = vmatpush1.bf16.msra.mxu1 %v3838_v57 }
  0x54   :  { %592 = vmatprep.subr.bf16.mxu1 %v3847_v60 }
  0x55   :  { %550 = vmatpush1.bf16.msra.mxu0 %v3844_v61 }
  0x56   :  { %551 = vmatprep.subr.bf16.mxu0 %v3853_v1  ;;  %v4475_v1 = vld [vmem:[%s5921_s2 + $0x8] sm:$0xff]  }
  0x57   :  { %593 = vmatpush1.bf16.msra.mxu1 %v3846_v4 }
  0x58   :  { %594 = vmatprep.subr.bf16.mxu1 %v3855_v7 }
  0x59   :  { %552 = vmatpush1.bf16.msra.mxu0 %v3852_v8 }
  0x5a   :  { %631 = vmatprep.subr.bf16.mxu0 %v3833_v11 }
  0x5b   :  { %595 = vmatpush1.bf16.msra.mxu1 %v3854_v12 }
  0x5c   :  { %3860 = vmatmul.mubr.msk.bf16.vlgmr.msra.gmra.mrb[8].mxu0 %vm541_vm1, %v76_v15  ;;  %674 = vmatprep.subr.bf16.mxu1 %v3835_v16 }
  0x5d   :  { %632 = vmatpush1.bf16.msra.mxu0 %v3832_v17  ;;  %663 = vmatprep.mubr.bf16.mxu0 %v5928_v0 }
  0x5e   :  { %633 = vmatprep.subr.bf16.mxu0 %v3841_v20  ;;  %3861 = vmatmul.mubr.msk.bf16.vlgmr.msra.gmra.mrb[8].mxu1 %vm541_vm1, %v76_v15  ;;  %v4164_v20 = vld [vmem:[%s5921_s2 + $0x20] sm:$0xff]  }
  0x5f   :  { %675 = vmatpush1.bf16.msra.mxu1 %v3834_v21  ;;  %706 = vmatprep.mubr.bf16.mxu1 %v5928_v0 }
  0x60   :  { %676 = vmatprep.subr.bf16.mxu1 %v3843_v24 }
  0x61   :  { %634 = vmatpush1.bf16.msra.mxu0 %v3840_v25 }
  0x62   :  { %635 = vmatprep.subr.bf16.mxu0 %v3849_v26  ;;  %v4165_v26 = vld [vmem:[%s5921_s2 + $0x28] sm:$0xff]  }
  0x63   :  { %677 = vmatpush1.bf16.msra.mxu1 %v3842_v29 }
  0x64   :  { %678 = vmatprep.subr.bf16.mxu1 %v3851_v30 }
  0x65   :  { %636 = vmatpush1.bf16.msra.mxu0 %v3848_v31 }
  0x66   :  { %637 = vmatprep.subr.bf16.mxu0 %v3857_v34 }
  0x67   :  { %679 = vmatpush1.bf16.msra.mxu1 %v3850_v35 }
  0x68   :  { %680 = vmatprep.subr.bf16.mxu1 %v3859_v36  ;;  %v4168_v36 = vld [vmem:[%s5922_s3] sm:$0xff]  }
  0x69   :  { %638 = vmatpush1.bf16.msra.mxu0 %v3856_v37  ;;  %v4169_v37 = vld [vmem:[%s5922_s3 + $0x8] sm:$0xff]  }
  0x6b   :  { %681 = vmatpush1.bf16.msra.mxu1 %v3858_v38  ;;  %v4170_v38 = vld [vmem:[%s5922_s3 + $0x10] sm:$0xff]  }
  0x6c   :  { %3862 = vmatmul.mubr.msk.bf16.vlgmr.msra.gmra.mrb[12].mxu0 %vm541_vm1, %v76_v15 }
  0x6d   :  { %863 = vmatprep.mubr.bf16.mxu0 %v5928_v0 }
  0x6e   :  { %3863 = vmatmul.mubr.msk.bf16.vlgmr.msra.gmra.mrb[12].mxu1 %vm541_vm1, %v76_v15 }
  0x6f   :  { %976 = vmatprep.mubr.bf16.mxu1 %v5928_v0 }
 0x117   :  { %v211_v39 = vpop.f32.mrb[0].mxu0  ;;  %v252_v41 = vpop.f32.mrb[0].mxu1 }
 0x118   :  { %v341_v40 = vpack.c.bf16 %v211_v39, %v211_v39  ;;  %v213_v42 = vpop.f32.mrb[1].mxu0  ;;  %v343_v43 = vpack.c.bf16 %v252_v41, %v252_v41  ;;  %v254_v45 = vpop.f32.mrb[1].mxu1  ;;  %v4171_v39 = vld [vmem:[%s5922_s3 + $0x18] sm:$0xff]   ;;  %v4173_v41 = vld [vmem:[%s5922_s3 + $0x28] sm:$0xff]  }
 0x119   :  { %v342_v44 = vpack.c.bf16 %v213_v42, %v213_v42  ;;  %v215_v46 = vpop.f32.mrb[2].mxu0  ;;  %v344_v48 = vpack.c.bf16 %v254_v45, %v254_v45  ;;  %v256_v50 = vpop.f32.mrb[2].mxu1  ;;  %v4623_v42 = vld [vmem:[%s5922_s3 + $0x30] sm:$0xff]  }
 0x11a   :  { %v808_v47 = vsel %vm806_vm2, %v341_v40, 0  ;;  %v216_v49 = vpop.f32.mrb[3].mxu0  ;;  %v814_v51 = vsel %vm806_vm2, %v343_v43, 0  ;;  %v257_v53 = vpop.f32.mrb[3].mxu1  ;;  %v4172_v40 = vld [vmem:[%s5922_s3 + $0x20] sm:$0xff]   ;;  %v4634_v43 = vld [vmem:[%s5922_s3 + $0x38] sm:$0xff]  }
 0x11b   :  { %3872 = vmatprep.subr.msk.bf16.mxu0 %vm806_vm2, %v342_v44  ;;  %3881 = vmatprep.subr.msk.bf16.mxu1 %vm806_vm2, %v344_v48  ;;  %s4296_s3 = smov [#allocation8]  }
 0x11c   :  { %832 = vmatpush1.bf16.msra.mxu0 %v808_v47  ;;  %945 = vmatpush1.bf16.msra.mxu1 %v814_v51  ;;  %s3795_s14 = sshll.u32 %s4296_s3, 4  ;;  %s3796_s14 = int_to_ptr.vmem [resolvable:$true] %s3795_s14 }
 0x11d   :  { %s4258_s15 = scalar_lea.vmem %s3796_s14, 512  ;;  %p4263_p11 = scmp.lt.s32.totalorder %s3796_s14, %s3796_s14 }
 0x11e   :  { %p4259_p10 = scmp.ne.s32.totalorder %s3796_s14, %s4258_s15  ;;  %p4264_p12 = scmp.lt.s32.totalorder %s4258_s15, %s4258_s15 }
 0x11f   :  { %v293_v54 = vpop.f32.mrb[4].mxu0  ;;  %3873 = vmatmul.mubr.msk.bf16.vlgmr.msra.gmra.mrb[16].mxu0 %vm781_vm3, %v4461_v52  ;;  %3882 = vmatmul.mubr.msk.bf16.vlgmr.msra.gmra.mrb[16].mxu1 %vm781_vm3, %v4461_v52 }
 0x120   :  { %v345_v55 = vpack.c.bf16 %v293_v54, %v293_v54  ;;  %v295_v56 = vpop.f32.mrb[5].mxu0  ;;  %873 = vmatprep.mubr.bf16.mxu0 %v5928_v0  ;;  %986 = vmatprep.mubr.bf16.mxu1 %v5928_v0  ;;  %p4265_p13 = por %p4264_p12, %p4263_p11 }
 0x121   :  { %v346_v57 = vpack.c.bf16 %v295_v56, %v295_v56  ;;  %v297_v58 = vpop.f32.mrb[6].mxu0  ;;  %v334_v59 = vpop.f32.mrb[4].mxu1 }
 0x122   :  { %v820_v60 = vsel %vm806_vm2, %v345_v55, 0  ;;  %v298_v61 = vpop.f32.mrb[7].mxu0  ;;  %v347_v62 = vpack.c.bf16 %v334_v59, %v334_v59  ;;  %v336_v63 = vpop.f32.mrb[5].mxu1  ;;  %p4266_p0 = pnand %p4265_p13, %p4259_p10 }
 0x123   :  { %3890 = vmatprep.subr.msk.bf16.mxu0 %vm806_vm2, %v346_v57  ;;  %v348_v2 = vpack.c.bf16 %v336_v63, %v336_v63  ;;  %v338_v3 = vpop.f32.mrb[6].mxu1 }
 0x124   :  { %1058 = vmatpush1.bf16.msra.mxu0 %v820_v60  ;;  %v826_v4 = vsel %vm806_vm2, %v347_v62, 0  ;;  %v339_v5 = vpop.f32.mrb[7].mxu1 }
 0x125   :  { %3899 = vmatprep.subr.msk.bf16.mxu1 %vm806_vm2, %v348_v2 }
 0x126   :  { %1171 = vmatpush1.bf16.msra.mxu1 %v826_v4 }
 0x127   :  { %3874 = vmatmul.mubr.msk.bf16.gmra.mrb[20].mxu0 %vm781_vm3, %v4475_v1  ;;  %3883 = vmatmul.mubr.msk.bf16.gmra.mrb[20].mxu1 %vm781_vm3, %v4475_v1 }
 0x128   :  { %883 = vmatprep.mubr.bf16.mxu0 %v5928_v0  ;;  %996 = vmatprep.mubr.bf16.mxu1 %v5928_v0 }
 0x12f   :  { %3875 = vmatmul.mubr.msk.bf16.gmra.mrb[24].mxu0 %vm781_vm3, %v4488_v6  ;;  %v579_v7 = vpop.f32.mrb[8].mxu0  ;;  %3884 = vmatmul.mubr.msk.bf16.gmra.mrb[24].mxu1 %vm781_vm3, %v4488_v6 }
 0x130   :  { %893 = vmatprep.mubr.bf16.mxu0 %v5928_v0  ;;  %v581_v8 = vpop.f32.mrb[9].mxu0  ;;  %1006 = vmatprep.mubr.bf16.mxu1 %v5928_v0 }
 0x131   :  { %v583_v9 = vpop.f32.mrb[10].mxu0  ;;  %v622_v10 = vpop.f32.mrb[8].mxu1 }
 0x132   :  { %v717_v11 = vpack.c.bf16 %v583_v9, %v579_v7  ;;  %v585_v12 = vpop.f32.mrb[11].mxu0  ;;  %v624_v13 = vpop.f32.mrb[9].mxu1 }
 0x133   :  { %v718_v15 = vpack.c.bf16 %v585_v12, %v581_v8  ;;  %v626_v16 = vpop.f32.mrb[10].mxu1 }
 0x134   :  { %v719_v17 = vpack.c.bf16 %v626_v16, %v622_v10  ;;  %v628_v18 = vpop.f32.mrb[11].mxu1 }
 0x135   :  { %1364 = vmatprep.subr.bf16.mxu0 %v718_v15  ;;  %v720_v19 = vpack.c.bf16 %v628_v18, %v624_v13 }
 0x137   :  { %3876 = vmatmul.mubr.msk.bf16.gmra.mrb[28].mxu0 %vm781_vm3, %v4163_v14  ;;  %1477 = vmatprep.subr.bf16.mxu1 %v720_v19 }
 0x138   :  { %3885 = vmatmul.mubr.msk.bf16.gmra.mrb[28].mxu1 %vm781_vm3, %v4163_v14  ;;  %903 = vmatprep.mubr.bf16.mxu0 %v5928_v0 }
 0x139   :  { %1016 = vmatprep.mubr.bf16.mxu1 %v5928_v0 }
 0x13f   :  { %3877 = vmatmul.mubr.msk.bf16.gmra.mrb[32].mxu0 %vm781_vm3, %v4164_v20  ;;  %v4507_v21 = vpop.f32.mrb[12].mxu0 }
 0x140   :  { %3886 = vmatmul.mubr.msk.bf16.gmra.mrb[32].mxu1 %vm781_vm3, %v4164_v20  ;;  %913 = vmatprep.mubr.bf16.mxu0 %v5928_v0  ;;  %v667_v22 = vpop.f32.mrb[13].mxu0 }
 0x141   :  { %1026 = vmatprep.mubr.bf16.mxu1 %v5928_v0  ;;  %v4512_v23 = vpop.f32.mrb[14].mxu0  ;;  %v708_v29 = vpop.f32.mrb[12].mxu1 }
 0x142   :  { %v721_v24 = vpack.c.bf16 %v4512_v23, %v4507_v21  ;;  %v671_v25 = vpop.f32.mrb[15].mxu0  ;;  %v710_v30 = vpop.f32.mrb[13].mxu1 }
 0x143   :  { %v722_v27 = vpack.c.bf16 %v671_v25, %v667_v22  ;;  %v712_v31 = vpop.f32.mrb[14].mxu1 }
 0x144   :  { %v723_v33 = vpack.c.bf16 %v712_v31, %v708_v29  ;;  %v714_v34 = vpop.f32.mrb[15].mxu1 }
 0x145   :  { %v724_v35 = vpack.c.bf16 %v714_v34, %v710_v30 }
 0x147   :  { %3878 = vmatmul.mubr.msk.bf16.gmra.mrb[36].mxu0 %vm781_vm3, %v4165_v26 }
 0x148   :  { %3887 = vmatmul.mubr.msk.bf16.gmra.mrb[36].mxu1 %vm781_vm3, %v4165_v26  ;;  %923 = vmatprep.mubr.bf16.mxu0 %v5928_v0 }
 0x149   :  { %1036 = vmatprep.mubr.bf16.mxu1 %v5928_v0 }
 0x14f   :  { %3879 = vmatmul.mubr.msk.bf16.gmra.mrb[40].mxu0 %vm781_vm3, %v4166_v28 }
 0x150   :  { %3888 = vmatmul.mubr.msk.bf16.gmra.mrb[40].mxu1 %vm781_vm3, %v4166_v28  ;;  %933 = vmatprep.mubr.bf16.mxu0 %v5928_v0 }
 0x151   :  { %1046 = vmatprep.mubr.bf16.mxu1 %v5928_v0 }
 0x157   :  { %3880 = vmatmul.mubr.msk.bf16.gmra.mrb[44].mxu0 %vm781_vm3, %v4167_v32 }
 0x158   :  { %3889 = vmatmul.mubr.msk.bf16.gmra.mrb[44].mxu1 %vm781_vm3, %v4167_v32  ;;  %1089 = vmatprep.mubr.bf16.mxu0 %v5928_v0 }
 0x159   :  { %1202 = vmatprep.mubr.bf16.mxu1 %v5928_v0 }
 0x15f   :  { %3891 = vmatmul.mubr.msk.bf16.vlgmr.msra.gmra.mrb[48].mxu0 %vm781_vm3, %v4461_v52 }
 0x160   :  { %3900 = vmatmul.mubr.msk.bf16.vlgmr.msra.gmra.mrb[48].mxu1 %vm781_vm3, %v4461_v52  ;;  %1365 = vmatpush1.bf16.msra.mxu0 %v717_v11 }
 0x161   :  { %1099 = vmatprep.mubr.bf16.mxu0 %v5928_v0  ;;  %1212 = vmatprep.mubr.bf16.mxu1 %v5928_v0 }
 0x162   :  { %1478 = vmatpush1.bf16.msra.mxu1 %v719_v17  ;;  %1590 = vmatprep.subr.bf16.mxu0 %v722_v27 }
 0x163   :  { %1703 = vmatprep.subr.bf16.mxu1 %v724_v35 }
 0x167   :  { %3892 = vmatmul.mubr.msk.bf16.gmra.mrb[52].mxu0 %vm781_vm3, %v4475_v1 }
 0x168   :  { %3901 = vmatmul.mubr.msk.bf16.gmra.mrb[52].mxu1 %vm781_vm3, %v4475_v1  ;;  %1109 = vmatprep.mubr.bf16.mxu0 %v5928_v0 }
 0x169   :  { %1222 = vmatprep.mubr.bf16.mxu1 %v5928_v0 }
 0x16f   :  { %3893 = vmatmul.mubr.msk.bf16.gmra.mrb[56].mxu0 %vm781_vm3, %v4488_v6 }
 0x170   :  { %3902 = vmatmul.mubr.msk.bf16.gmra.mrb[56].mxu1 %vm781_vm3, %v4488_v6  ;;  %1119 = vmatprep.mubr.bf16.mxu0 %v5928_v0 }
 0x171   :  { %1232 = vmatprep.mubr.bf16.mxu1 %v5928_v0 }
 0x177   :  { %3894 = vmatmul.mubr.msk.bf16.gmra.mrb[60].mxu0 %vm781_vm3, %v4163_v14 }
 0x178   :  { %3903 = vmatmul.mubr.msk.bf16.gmra.mrb[60].mxu1 %vm781_vm3, %v4163_v14  ;;  %1129 = vmatprep.mubr.bf16.mxu0 %v5928_v0 }
 0x179   :  { %1242 = vmatprep.mubr.bf16.mxu1 %v5928_v0 }
 0x17f   :  { %3895 = vmatmul.mubr.msk.bf16.gmra.mrb[64].mxu0 %vm781_vm3, %v4164_v20 }
 0x180   :  { %3904 = vmatmul.mubr.msk.bf16.gmra.mrb[64].mxu1 %vm781_vm3, %v4164_v20  ;;  %1139 = vmatprep.mubr.bf16.mxu0 %v5928_v0 }
 0x181   :  { %1252 = vmatprep.mubr.bf16.mxu1 %v5928_v0 }
 0x187   :  { %3896 = vmatmul.mubr.msk.bf16.gmra.mrb[68].mxu0 %vm781_vm3, %v4165_v26 }
 0x188   :  { %3905 = vmatmul.mubr.msk.bf16.gmra.mrb[68].mxu1 %vm781_vm3, %v4165_v26  ;;  %1149 = vmatprep.mubr.bf16.mxu0 %v5928_v0 }
 0x189   :  { %1262 = vmatprep.mubr.bf16.mxu1 %v5928_v0 }
 0x18f   :  { %3897 = vmatmul.mubr.msk.bf16.gmra.mrb[72].mxu0 %vm781_vm3, %v4166_v28 }
 0x190   :  { %3906 = vmatmul.mubr.msk.bf16.gmra.mrb[72].mxu1 %vm781_vm3, %v4166_v28  ;;  %1159 = vmatprep.mubr.bf16.mxu0 %v5928_v0 }
 0x191   :  { %1272 = vmatprep.mubr.bf16.mxu1 %v5928_v0 }
 0x197   :  { %3898 = vmatmul.mubr.msk.bf16.gmra.mrb[76].mxu0 %vm781_vm3, %v4167_v32 }
 0x198   :  { %3907 = vmatmul.mubr.msk.bf16.gmra.mrb[76].mxu1 %vm781_vm3, %v4167_v32  ;;  %1396 = vmatprep.mubr.bf16.mxu0 %v5928_v0 }
 0x199   :  { %1509 = vmatprep.mubr.bf16.mxu1 %v5928_v0 }
 0x19f   :  { %3916 = vmatmul.mubr.msk.bf16.vlgmr.msra.gmra.mrb[80].mxu0 %vm1339_vm4, %v4168_v36 }
 0x1a0   :  { %3924 = vmatmul.mubr.msk.bf16.vlgmr.msra.gmra.mrb[80].mxu1 %vm1339_vm4, %v4168_v36  ;;  %1591 = vmatpush1.bf16.msra.mxu0 %v721_v24 }
 0x1a1   :  { %1406 = vmatprep.mubr.bf16.mxu0 %v5928_v0  ;;  %1519 = vmatprep.mubr.bf16.mxu1 %v5928_v0 }
 0x1a2   :  { %1704 = vmatpush1.bf16.msra.mxu1 %v723_v33 }
 0x1a7   :  { %3917 = vmatmul.mubr.msk.bf16.gmra.mrb[84].mxu0 %vm1339_vm4, %v4169_v37 }
 0x1a8   :  { %3925 = vmatmul.mubr.msk.bf16.gmra.mrb[84].mxu1 %vm1339_vm4, %v4169_v37  ;;  %1416 = vmatprep.mubr.bf16.mxu0 %v5928_v0 }
 0x1a9   :  { %1529 = vmatprep.mubr.bf16.mxu1 %v5928_v0 }
 0x1af   :  { %3918 = vmatmul.mubr.msk.bf16.gmra.mrb[88].mxu0 %vm1339_vm4, %v4170_v38 }
 0x1b0   :  { %3926 = vmatmul.mubr.msk.bf16.gmra.mrb[88].mxu1 %vm1339_vm4, %v4170_v38  ;;  %1426 = vmatprep.mubr.bf16.mxu0 %v5928_v0 }
 0x1b1   :  { %1539 = vmatprep.mubr.bf16.mxu1 %v5928_v0 }
 0x1b7   :  { %3919 = vmatmul.mubr.msk.bf16.gmra.mrb[92].mxu0 %vm1339_vm4, %v4171_v39 }
 0x1b8   :  { %3927 = vmatmul.mubr.msk.bf16.gmra.mrb[92].mxu1 %vm1339_vm4, %v4171_v39  ;;  %1436 = vmatprep.mubr.bf16.mxu0 %v5928_v0 }
 0x1b9   :  { %1549 = vmatprep.mubr.bf16.mxu1 %v5928_v0 }
 0x1bf   :  { %3920 = vmatmul.mubr.msk.bf16.gmra.mrb[96].mxu0 %vm1339_vm4, %v4172_v40 }
 0x1c0   :  { %3928 = vmatmul.mubr.msk.bf16.gmra.mrb[96].mxu1 %vm1339_vm4, %v4172_v40  ;;  %1446 = vmatprep.mubr.bf16.mxu0 %v5928_v0 }
 0x1c1   :  { %1559 = vmatprep.mubr.bf16.mxu1 %v5928_v0 }
 0x1c7   :  { %3921 = vmatmul.mubr.msk.bf16.gmra.mrb[100].mxu0 %vm1339_vm4, %v4173_v41 }
 0x1c8   :  { %3929 = vmatmul.mubr.msk.bf16.gmra.mrb[100].mxu1 %vm1339_vm4, %v4173_v41  ;;  %1456 = vmatprep.mubr.bf16.mxu0 %v5928_v0 }
 0x1c9   :  { %1569 = vmatprep.mubr.bf16.mxu1 %v5928_v0 }
 0x1cf   :  { %3922 = vmatmul.mubr.msk.bf16.gmra.mrb[104].mxu0 %vm1339_vm4, %v4623_v42 }
 0x1d0   :  { %3930 = vmatmul.mubr.msk.bf16.gmra.mrb[104].mxu1 %vm1339_vm4, %v4623_v42  ;;  %1466 = vmatprep.mubr.bf16.mxu0 %v5928_v0 }
 0x1d1   :  { %1579 = vmatprep.mubr.bf16.mxu1 %v5928_v0 }
 0x1d7   :  { %3923 = vmatmul.mubr.msk.bf16.gmra.mrb[108].mxu0 %vm1339_vm4, %v4634_v43 }
 0x1d8   :  { %3931 = vmatmul.mubr.msk.bf16.gmra.mrb[108].mxu1 %vm1339_vm4, %v4634_v43  ;;  %1622 = vmatprep.mubr.bf16.mxu0 %v5928_v0 }
 0x1d9   :  { %1735 = vmatprep.mubr.bf16.mxu1 %v5928_v0 }
 0x1df   :  { %3932 = vmatmul.mubr.msk.bf16.vlgmr.msra.gmra.mrb[112].mxu0 %vm1339_vm4, %v4168_v36 }
 0x1e0   :  { %3940 = vmatmul.mubr.msk.bf16.vlgmr.msra.gmra.mrb[112].mxu1 %vm1339_vm4, %v4168_v36  ;;  %1632 = vmatprep.mubr.bf16.mxu0 %v5928_v0 }
 0x1e1   :  { %1745 = vmatprep.mubr.bf16.mxu1 %v5928_v0 }
 0x1e7   :  { %3933 = vmatmul.mubr.msk.bf16.gmra.mrb[116].mxu0 %vm1339_vm4, %v4169_v37 }
 0x1e8   :  { %3941 = vmatmul.mubr.msk.bf16.gmra.mrb[116].mxu1 %vm1339_vm4, %v4169_v37  ;;  %1642 = vmatprep.mubr.bf16.mxu0 %v5928_v0 }
 0x1e9   :  { %1755 = vmatprep.mubr.bf16.mxu1 %v5928_v0 }
 0x1ef   :  { %3934 = vmatmul.mubr.msk.bf16.gmra.mrb[120].mxu0 %vm1339_vm4, %v4170_v38 }
 0x1f0   :  { %3942 = vmatmul.mubr.msk.bf16.gmra.mrb[120].mxu1 %vm1339_vm4, %v4170_v38  ;;  %1652 = vmatprep.mubr.bf16.mxu0 %v5928_v0 }
 0x1f1   :  { %1765 = vmatprep.mubr.bf16.mxu1 %v5928_v0 }
 0x1f2   :  { %v4654_v44 = vpop.f32.mrb[16].mxu0  ;;  %v4658_v46 = vpop.f32.mrb[16].mxu1 }
 0x1f3   :  { %v4656_v45 = vpop.f32.mrb[17].mxu0  ;;  %v4662_v48 = vpop.f32.mrb[17].mxu1 }
 0x1f4   :  { %v4660_v47 = vpop.f32.mrb[18].mxu0  ;;  %v4666_v50 = vpop.f32.mrb[18].mxu1 }
 0x1f5   :  { %v4664_v49 = vpop.f32.mrb[19].mxu0  ;;  %v4668_v51 = vpop.f32.mrb[19].mxu1 }
 0x1f7   :  { %3935 = vmatmul.mubr.msk.bf16.gmra.mrb[124].mxu0 %vm1339_vm4, %v4171_v39 }
 0x1f8   :  { %3943 = vmatmul.mubr.msk.bf16.gmra.mrb[124].mxu1 %vm1339_vm4, %v4171_v39  ;;  %1662 = vmatprep.mubr.bf16.mxu0 %v5928_v0 }
 0x1f9   :  { %1775 = vmatprep.mubr.bf16.mxu1 %v5928_v0 }
 0x1fa   :  { %v4674_v52 = vpop.f32.mrb[20].mxu0  ;;  %v4678_v54 = vpop.f32.mrb[20].mxu1 }
 0x1fb   :  { %v4676_v53 = vpop.f32.mrb[21].mxu0  ;;  %v4682_v56 = vpop.f32.mrb[21].mxu1 }
 0x1fc   :  { %v4680_v55 = vpop.f32.mrb[22].mxu0  ;;  %v4686_v58 = vpop.f32.mrb[22].mxu1 }
 0x1fd   :  { %v4684_v57 = vpop.f32.mrb[23].mxu0  ;;  %v4688_v59 = vpop.f32.mrb[23].mxu1 }
 0x1ff   :  { %3936 = vmatmul.mubr.msk.bf16.gmra.mrb[128].mxu0 %vm1339_vm4, %v4172_v40 }
 0x200   :  { %3944 = vmatmul.mubr.msk.bf16.gmra.mrb[128].mxu1 %vm1339_vm4, %v4172_v40  ;;  %1672 = vmatprep.mubr.bf16.mxu0 %v5928_v0 }
 0x201   :  { %1785 = vmatprep.mubr.bf16.mxu1 %v5928_v0 }
 0x202   :  { %v4694_v60 = vpop.f32.mrb[24].mxu0  ;;  %v4698_v62 = vpop.f32.mrb[24].mxu1 }
 0x203   :  { %v4696_v61 = vpop.f32.mrb[25].mxu0  ;;  %v4702_v1 = vpop.f32.mrb[25].mxu1 }
 0x204   :  { %v4700_v63 = vpop.f32.mrb[26].mxu0  ;;  %v4706_v3 = vpop.f32.mrb[26].mxu1 }
 0x205   :  { %v4704_v2 = vpop.f32.mrb[27].mxu0  ;;  %v4708_v4 = vpop.f32.mrb[27].mxu1 }
 0x207   :  { %3937 = vmatmul.mubr.msk.bf16.gmra.mrb[132].mxu0 %vm1339_vm4, %v4173_v41 }
 0x208   :  { %3945 = vmatmul.mubr.msk.bf16.gmra.mrb[132].mxu1 %vm1339_vm4, %v4173_v41  ;;  %1682 = vmatprep.mubr.bf16.mxu0 %v5928_v0 }
 0x209   :  { %1795 = vmatprep.mubr.bf16.mxu1 %v5928_v0 }
 0x20a   :  { %v4714_v5 = vpop.f32.mrb[28].mxu0 }
 0x20b   :  { %v4716_v6 = vpop.f32.mrb[29].mxu0  ;;  %v4718_v7 = vpop.f32.mrb[28].mxu1 }
 0x20c   :  { %v4720_v8 = vpop.f32.mrb[30].mxu0  ;;  %v4722_v9 = vpop.f32.mrb[29].mxu1 }
 0x20d   :  { %v4724_v10 = vpop.f32.mrb[31].mxu0  ;;  %v4726_v11 = vpop.f32.mrb[30].mxu1 }
 0x20e   :  { %v4728_v12 = vpop.f32.mrb[31].mxu1 }
 0x20f   :  { %3938 = vmatmul.mubr.msk.bf16.gmra.mrb[136].mxu0 %vm1339_vm4, %v4623_v42 }
 0x210   :  { %3946 = vmatmul.mubr.msk.bf16.gmra.mrb[136].mxu1 %vm1339_vm4, %v4623_v42  ;;  %1692 = vmatprep.mubr.bf16.mxu0 %v5928_v0 }
 0x211   :  { %1805 = vmatprep.mubr.bf16.mxu1 %v5928_v0 }
 0x212   :  { %v4736_v13 = vpop.f32.mrb[32].mxu0 }
 0x213   :  { %v4738_v14 = vpop.f32.mrb[33].mxu0  ;;  %v4740_v15 = vpop.f32.mrb[32].mxu1 }
 0x214   :  { %v4742_v16 = vpop.f32.mrb[34].mxu0  ;;  %v4744_v17 = vpop.f32.mrb[33].mxu1 }
 0x215   :  { %v4746_v18 = vpop.f32.mrb[35].mxu0  ;;  %v4748_v19 = vpop.f32.mrb[34].mxu1 }
 0x216   :  { %v4750_v20 = vpop.f32.mrb[35].mxu1 }
 0x217   :  { %3939 = vmatmul.mubr.msk.bf16.gmra.mrb[140].mxu0 %vm1339_vm4, %v4634_v43 }
 0x218   :  { %3947 = vmatmul.mubr.msk.bf16.gmra.mrb[140].mxu1 %vm1339_vm4, %v4634_v43 }
 0x219   :  { %2200 = vmatprep.mubr.bf16.mxu1 %v5928_v0 }
 0x21a   :  { %v4757_v21 = vpop.f32.mrb[36].mxu0 }
 0x21b   :  { %v4759_v22 = vpop.f32.mrb[37].mxu0  ;;  %v4761_v23 = vpop.f32.mrb[36].mxu1 }
 0x21c   :  { %v4763_v24 = vpop.f32.mrb[38].mxu0  ;;  %v4765_v25 = vpop.f32.mrb[37].mxu1 }
 0x21d   :  { %v4767_v26 = vpop.f32.mrb[39].mxu0  ;;  %v4769_v27 = vpop.f32.mrb[38].mxu1 }
 0x21e   :  { %v4771_v28 = vpop.f32.mrb[39].mxu1 }
 0x222   :  { %v4773_v29 = vpop.f32.mrb[40].mxu0 }
 0x223   :  { %v4775_v30 = vpop.f32.mrb[41].mxu0  ;;  %v4777_v31 = vpop.f32.mrb[40].mxu1 }
 0x224   :  { %v4779_v32 = vpop.f32.mrb[42].mxu0  ;;  %v4781_v33 = vpop.f32.mrb[41].mxu1 }
 0x225   :  { %5944 = vst [vmem:[#allocation12_spill] sm:$0xff] %v4779_v32  ;;  %v4783_v34 = vpop.f32.mrb[43].mxu0  ;;  %v4785_v35 = vpop.f32.mrb[42].mxu1 }
 0x226   :  { %5945 = vst [vmem:[#allocation13_spill] sm:$0xff] %v4783_v34  ;;  %5946 = vst [vmem:[#allocation14_spill] sm:$0xff] %v4785_v35  ;;  %v4787_v36 = vpop.f32.mrb[43].mxu1 }
 0x227   :  { %5947 = vst [vmem:[#allocation15_spill] sm:$0xff] %v4787_v36 }
 0x22a   :  { %v4789_v37 = vpop.f32.mrb[44].mxu0 }
 0x22b   :  { %5948 = vst [vmem:[#allocation16_spill] sm:$0xff] %v4789_v37  ;;  %v4791_v38 = vpop.f32.mrb[45].mxu0  ;;  %v4793_v39 = vpop.f32.mrb[44].mxu1 }
 0x22c   :  { %5949 = vst [vmem:[#allocation17_spill] sm:$0xff] %v4791_v38  ;;  %5950 = vst [vmem:[#allocation18_spill] sm:$0xff] %v4793_v39  ;;  %v4795_v40 = vpop.f32.mrb[46].mxu0  ;;  %v4797_v41 = vpop.f32.mrb[45].mxu1 }
 0x22d   :  { %5951 = vst [vmem:[#allocation19_spill] sm:$0xff] %v4795_v40  ;;  %5952 = vst [vmem:[#allocation20_spill] sm:$0xff] %v4797_v41  ;;  %v4799_v42 = vpop.f32.mrb[47].mxu0  ;;  %v4801_v43 = vpop.f32.mrb[46].mxu1 }
 0x22e   :  { %5953 = vst [vmem:[#allocation21_spill] sm:$0xff] %v4799_v42  ;;  %5954 = vst [vmem:[#allocation22_spill] sm:$0xff] %v4801_v43  ;;  %v4803_v0 = vpop.f32.mrb[47].mxu1 }
 0x22f   :  { %5955 = vst [vmem:[#allocation23_spill] sm:$0xff] %v4803_v0 }
 0x232   :  { %v4805_v34 = vpop.f32.mrb[48].mxu0 }
 0x233   :  { %5956 = vst [vmem:[#allocation24_spill] sm:$0xff] %v4805_v34  ;;  %v4807_v35 = vpop.f32.mrb[49].mxu0  ;;  %v4809_v36 = vpop.f32.mrb[48].mxu1 }
 0x234   :  { %5957 = vst [vmem:[#allocation25_spill] sm:$0xff] %v4807_v35  ;;  %5958 = vst [vmem:[#allocation26_spill] sm:$0xff] %v4809_v36  ;;  %v4811_v37 = vpop.f32.mrb[50].mxu0  ;;  %v4813_v38 = vpop.f32.mrb[49].mxu1 }
 0x235   :  { %5959 = vst [vmem:[#allocation27_spill] sm:$0xff] %v4811_v37  ;;  %5960 = vst [vmem:[#allocation28_spill] sm:$0xff] %v4813_v38  ;;  %v4815_v39 = vpop.f32.mrb[51].mxu0  ;;  %v4817_v40 = vpop.f32.mrb[50].mxu1 }
 0x236   :  { %5961 = vst [vmem:[#allocation29_spill] sm:$0xff] %v4815_v39  ;;  %5962 = vst [vmem:[#allocation30_spill] sm:$0xff] %v4817_v40  ;;  %v4819_v41 = vpop.f32.mrb[51].mxu1 }
 0x237   :  { %5963 = vst [vmem:[#allocation31_spill] sm:$0xff] %v4819_v41 }
 0x23a   :  { %v4821_v42 = vpop.f32.mrb[52].mxu0 }
 0x23b   :  { %5964 = vst [vmem:[#allocation32_spill] sm:$0xff] %v4821_v42  ;;  %v4823_v43 = vpop.f32.mrb[53].mxu0  ;;  %v4825_v0 = vpop.f32.mrb[52].mxu1 }
 0x23c   :  { %5965 = vst [vmem:[#allocation33_spill] sm:$0xff] %v4823_v43  ;;  %5966 = vst [vmem:[#allocation34_spill] sm:$0xff] %v4825_v0  ;;  %v4827_v34 = vpop.f32.mrb[54].mxu0  ;;  %v4829_v35 = vpop.f32.mrb[53].mxu1 }
 0x23d   :  { %5967 = vst [vmem:[#allocation35_spill] sm:$0xff] %v4827_v34  ;;  %5968 = vst [vmem:[#allocation36_spill] sm:$0xff] %v4829_v35  ;;  %v4831_v36 = vpop.f32.mrb[55].mxu0  ;;  %v4833_v37 = vpop.f32.mrb[54].mxu1 }
 0x23e   :  { %5969 = vst [vmem:[#allocation37_spill] sm:$0xff] %v4831_v36  ;;  %5970 = vst [vmem:[#allocation38_spill] sm:$0xff] %v4833_v37  ;;  %v4835_v38 = vpop.f32.mrb[55].mxu1 }
 0x23f   :  { %5971 = vst [vmem:[#allocation39_spill] sm:$0xff] %v4835_v38 }
 0x242   :  { %v4837_v39 = vpop.f32.mrb[56].mxu0 }
 0x243   :  { %5972 = vst [vmem:[#allocation40_spill] sm:$0xff] %v4837_v39  ;;  %v4839_v40 = vpop.f32.mrb[57].mxu0  ;;  %v4841_v41 = vpop.f32.mrb[56].mxu1 }
 0x244   :  { %5973 = vst [vmem:[#allocation41_spill] sm:$0xff] %v4839_v40  ;;  %5974 = vst [vmem:[#allocation42_spill] sm:$0xff] %v4841_v41  ;;  %v4843_v42 = vpop.f32.mrb[58].mxu0  ;;  %v4845_v43 = vpop.f32.mrb[57].mxu1 }
 0x245   :  { %5975 = vst [vmem:[#allocation43_spill] sm:$0xff] %v4843_v42  ;;  %5976 = vst [vmem:[#allocation44_spill] sm:$0xff] %v4845_v43  ;;  %v4847_v0 = vpop.f32.mrb[59].mxu0  ;;  %v4849_v34 = vpop.f32.mrb[58].mxu1 }
 0x246   :  { %5977 = vst [vmem:[#allocation45_spill] sm:$0xff] %v4847_v0  ;;  %5978 = vst [vmem:[#allocation46_spill] sm:$0xff] %v4849_v34  ;;  %v4851_v35 = vpop.f32.mrb[59].mxu1 }
 0x247   :  { %5979 = vst [vmem:[#allocation47_spill] sm:$0xff] %v4851_v35 }
 0x24a   :  { %v4853_v36 = vpop.f32.mrb[60].mxu0 }
 0x24b   :  { %5980 = vst [vmem:[#allocation48_spill] sm:$0xff] %v4853_v36  ;;  %v4855_v37 = vpop.f32.mrb[61].mxu0  ;;  %v4857_v38 = vpop.f32.mrb[60].mxu1 }
 0x24c   :  { %5981 = vst [vmem:[#allocation49_spill] sm:$0xff] %v4855_v37  ;;  %5982 = vst [vmem:[#allocation50_spill] sm:$0xff] %v4857_v38  ;;  %v4859_v39 = vpop.f32.mrb[62].mxu0  ;;  %v4861_v40 = vpop.f32.mrb[61].mxu1 }
 0x24d   :  { %5983 = vst [vmem:[#allocation51_spill] sm:$0xff] %v4859_v39  ;;  %5984 = vst [vmem:[#allocation52_spill] sm:$0xff] %v4861_v40  ;;  %v4863_v41 = vpop.f32.mrb[63].mxu0  ;;  %v4865_v42 = vpop.f32.mrb[62].mxu1 }
 0x24e   :  { %5985 = vst [vmem:[#allocation53_spill] sm:$0xff] %v4863_v41  ;;  %5986 = vst [vmem:[#allocation54_spill] sm:$0xff] %v4865_v42  ;;  %v4867_v43 = vpop.f32.mrb[63].mxu1 }
 0x24f   :  { %5987 = vst [vmem:[#allocation55_spill] sm:$0xff] %v4867_v43 }
 0x252   :  { %v4869_v0 = vpop.f32.mrb[64].mxu0 }
 0x253   :  { %5988 = vst [vmem:[#allocation56_spill] sm:$0xff] %v4869_v0  ;;  %v4871_v34 = vpop.f32.mrb[65].mxu0  ;;  %v4873_v35 = vpop.f32.mrb[64].mxu1 }
 0x254   :  { %5989 = vst [vmem:[#allocation57_spill] sm:$0xff] %v4871_v34  ;;  %5990 = vst [vmem:[#allocation58_spill] sm:$0xff] %v4873_v35  ;;  %v4875_v36 = vpop.f32.mrb[66].mxu0  ;;  %v4877_v37 = vpop.f32.mrb[65].mxu1 }
 0x255   :  { %5991 = vst [vmem:[#allocation59_spill] sm:$0xff] %v4875_v36  ;;  %5992 = vst [vmem:[#allocation60_spill] sm:$0xff] %v4877_v37  ;;  %v4879_v38 = vpop.f32.mrb[67].mxu0  ;;  %v4881_v39 = vpop.f32.mrb[66].mxu1 }
 0x256   :  { %5993 = vst [vmem:[#allocation61_spill] sm:$0xff] %v4879_v38  ;;  %5994 = vst [vmem:[#allocation62_spill] sm:$0xff] %v4881_v39  ;;  %v4883_v40 = vpop.f32.mrb[67].mxu1 }
 0x257   :  { %5995 = vst [vmem:[#allocation63_spill] sm:$0xff] %v4883_v40 }
 0x25a   :  { %v4885_v41 = vpop.f32.mrb[68].mxu0 }
 0x25b   :  { %5996 = vst [vmem:[#allocation64_spill] sm:$0xff] %v4885_v41  ;;  %v4887_v42 = vpop.f32.mrb[69].mxu0  ;;  %v4889_v43 = vpop.f32.mrb[68].mxu1 }
 0x25c   :  { %5997 = vst [vmem:[#allocation65_spill] sm:$0xff] %v4887_v42  ;;  %5998 = vst [vmem:[#allocation66_spill] sm:$0xff] %v4889_v43  ;;  %v4891_v0 = vpop.f32.mrb[70].mxu0  ;;  %v4893_v34 = vpop.f32.mrb[69].mxu1 }
 0x25d   :  { %5999 = vst [vmem:[#allocation67_spill] sm:$0xff] %v4891_v0  ;;  %6000 = vst [vmem:[#allocation68_spill] sm:$0xff] %v4893_v34  ;;  %v4895_v35 = vpop.f32.mrb[71].mxu0  ;;  %v4897_v36 = vpop.f32.mrb[70].mxu1 }
 0x25e   :  { %6001 = vst [vmem:[#allocation69_spill] sm:$0xff] %v4895_v35  ;;  %6002 = vst [vmem:[#allocation70_spill] sm:$0xff] %v4897_v36  ;;  %v4899_v37 = vpop.f32.mrb[71].mxu1 }
 0x25f   :  { %6003 = vst [vmem:[#allocation71_spill] sm:$0xff] %v4899_v37 }
 0x262   :  { %v4901_v38 = vpop.f32.mrb[72].mxu0 }
 0x263   :  { %6004 = vst [vmem:[#allocation72_spill] sm:$0xff] %v4901_v38  ;;  %v4903_v39 = vpop.f32.mrb[73].mxu0  ;;  %v4905_v40 = vpop.f32.mrb[72].mxu1 }
 0x264   :  { %6005 = vst [vmem:[#allocation73_spill] sm:$0xff] %v4903_v39  ;;  %6006 = vst [vmem:[#allocation74_spill] sm:$0xff] %v4905_v40  ;;  %v4907_v41 = vpop.f32.mrb[74].mxu0  ;;  %v4909_v42 = vpop.f32.mrb[73].mxu1 }
 0x265   :  { %6007 = vst [vmem:[#allocation75_spill] sm:$0xff] %v4907_v41  ;;  %6008 = vst [vmem:[#allocation76_spill] sm:$0xff] %v4909_v42  ;;  %v4911_v43 = vpop.f32.mrb[75].mxu0  ;;  %v4913_v0 = vpop.f32.mrb[74].mxu1 }
 0x266   :  { %6009 = vst [vmem:[#allocation77_spill] sm:$0xff] %v4911_v43  ;;  %6010 = vst [vmem:[#allocation78_spill] sm:$0xff] %v4913_v0  ;;  %v4915_v34 = vpop.f32.mrb[75].mxu1 }
 0x267   :  { %6011 = vst [vmem:[#allocation79_spill] sm:$0xff] %v4915_v34 }
 0x26a   :  { %v4917_v35 = vpop.f32.mrb[76].mxu0 }
 0x26b   :  { %6012 = vst [vmem:[#allocation80_spill] sm:$0xff] %v4917_v35  ;;  %v4919_v36 = vpop.f32.mrb[77].mxu0  ;;  %v4921_v37 = vpop.f32.mrb[76].mxu1 }
 0x26c   :  { %6013 = vst [vmem:[#allocation81_spill] sm:$0xff] %v4919_v36  ;;  %6014 = vst [vmem:[#allocation82_spill] sm:$0xff] %v4921_v37  ;;  %v4923_v38 = vpop.f32.mrb[78].mxu0  ;;  %v4925_v39 = vpop.f32.mrb[77].mxu1 }
 0x26d   :  { %6015 = vst [vmem:[#allocation83_spill] sm:$0xff] %v4923_v38  ;;  %6016 = vst [vmem:[#allocation84_spill] sm:$0xff] %v4925_v39  ;;  %v4927_v40 = vpop.f32.mrb[79].mxu0  ;;  %v4929_v41 = vpop.f32.mrb[78].mxu1 }
 0x26e   :  { %6017 = vst [vmem:[#allocation85_spill] sm:$0xff] %v4927_v40  ;;  %6018 = vst [vmem:[#allocation86_spill] sm:$0xff] %v4929_v41  ;;  %v4931_v42 = vpop.f32.mrb[79].mxu1 }
 0x26f   :  { %6019 = vst [vmem:[#allocation87_spill] sm:$0xff] %v4931_v42 }
 0x272   :  { %v1398_v43 = vpop.f32.mrb[80].mxu0 }
 0x273   :  { %v4934_v0 = vmul.f32 %v1398_v43, %v4654_v44  ;;  %v1511_v34 = vpop.f32.mrb[80].mxu1  ;;  %v1400_v35 = vpop.f32.mrb[81].mxu0 }
 0x274   :  { %v4937_v36 = vmul.f32 %v1511_v34, %v4658_v46  ;;  %v4940_v37 = vmul.f32 %v1400_v35, %v4656_v45  ;;  %v1513_v38 = vpop.f32.mrb[81].mxu1  ;;  %v1402_v39 = vpop.f32.mrb[82].mxu0 }
 0x275   :  { %v4943_v40 = vmul.f32 %v1513_v38, %v4662_v48  ;;  %v4946_v41 = vmul.f32 %v1402_v39, %v4660_v47  ;;  %v1515_v42 = vpop.f32.mrb[82].mxu1  ;;  %v1404_v32 = vpop.f32.mrb[83].mxu0 }
 0x276   :  { %v4949_v44 = vmul.f32 %v1515_v42, %v4666_v50  ;;  %v4952_v43 = vmul.f32 %v1404_v32, %v4664_v49  ;;  %v1517_v46 = vpop.f32.mrb[83].mxu1 }
 0x277   :  { %v4955_v45 = vmul.f32 %v1517_v46, %v4668_v51 }
 0x27a   :  { %v1408_v34 = vpop.f32.mrb[84].mxu0 }
 0x27b   :  { %v4958_v35 = vmul.f32 %v1408_v34, %v4674_v52  ;;  %v1521_v48 = vpop.f32.mrb[84].mxu1  ;;  %v1410_v38 = vpop.f32.mrb[85].mxu0 }
 0x27c   :  { %v4961_v47 = vmul.f32 %v1521_v48, %v4678_v54  ;;  %v4964_v39 = vmul.f32 %v1410_v38, %v4676_v53  ;;  %v1523_v50 = vpop.f32.mrb[85].mxu1  ;;  %v1412_v42 = vpop.f32.mrb[86].mxu0 }
 0x27d   :  { %v4967_v49 = vmul.f32 %v1523_v50, %v4682_v56  ;;  %v4970_v51 = vmul.f32 %v1412_v42, %v4680_v55  ;;  %v1525_v32 = vpop.f32.mrb[86].mxu1  ;;  %v1414_v46 = vpop.f32.mrb[87].mxu0 }
 0x27e   :  { %v4973_v52 = vmul.f32 %v1525_v32, %v4686_v58  ;;  %v4976_v34 = vmul.f32 %v1414_v46, %v4684_v57  ;;  %v1527_v54 = vpop.f32.mrb[87].mxu1 }
 0x27f   :  { %v4979_v53 = vmul.f32 %v1527_v54, %v4688_v59 }
 0x282   :  { %v1418_v48 = vpop.f32.mrb[88].mxu0 }
 0x283   :  { %v4982_v38 = vmul.f32 %v1418_v48, %v4694_v60  ;;  %v1531_v56 = vpop.f32.mrb[88].mxu1  ;;  %v1420_v50 = vpop.f32.mrb[89].mxu0 }
 0x284   :  { %v4985_v55 = vmul.f32 %v1531_v56, %v4698_v62  ;;  %v4988_v42 = vmul.f32 %v1420_v50, %v4696_v61  ;;  %v1533_v58 = vpop.f32.mrb[89].mxu1  ;;  %v1422_v32 = vpop.f32.mrb[90].mxu0 }
 0x285   :  { %v4991_v57 = vmul.f32 %v1533_v58, %v4702_v1  ;;  %v4994_v59 = vmul.f32 %v1422_v32, %v4700_v63  ;;  %v1535_v46 = vpop.f32.mrb[90].mxu1  ;;  %v1424_v54 = vpop.f32.mrb[91].mxu0 }
 0x286   :  { %v4997_v60 = vmul.f32 %v1535_v46, %v4706_v3  ;;  %v5000_v48 = vmul.f32 %v1424_v54, %v4704_v2  ;;  %v1537_v62 = vpop.f32.mrb[91].mxu1 }
 0x287   :  { %v5003_v61 = vmul.f32 %v1537_v62, %v4708_v4 }
 0x28a   :  { %v1428_v56 = vpop.f32.mrb[92].mxu0 }
 0x28b   :  { %v5006_v50 = vmul.f32 %v1428_v56, %v4714_v5  ;;  %v1541_v1 = vpop.f32.mrb[92].mxu1  ;;  %v1430_v58 = vpop.f32.mrb[93].mxu0 }
 0x28c   :  { %v5009_v63 = vmul.f32 %v1541_v1, %v4718_v7  ;;  %v5012_v32 = vmul.f32 %v1430_v58, %v4716_v6  ;;  %v1543_v3 = vpop.f32.mrb[93].mxu1  ;;  %v1432_v46 = vpop.f32.mrb[94].mxu0 }
 0x28d   :  { %v5015_v2 = vmul.f32 %v1543_v3, %v4722_v9  ;;  %v5018_v4 = vmul.f32 %v1432_v46, %v4720_v8  ;;  %v1545_v54 = vpop.f32.mrb[94].mxu1  ;;  %v1434_v62 = vpop.f32.mrb[95].mxu0 }
 0x28e   :  { %v5021_v5 = vmul.f32 %v1545_v54, %v4726_v11  ;;  %v5024_v56 = vmul.f32 %v1434_v62, %v4724_v10  ;;  %v1547_v7 = vpop.f32.mrb[95].mxu1 }
 0x28f   :  { %v5027_v6 = vmul.f32 %v1547_v7, %v4728_v12 }
 0x292   :  { %v1438_v1 = vpop.f32.mrb[96].mxu0 }
 0x293   :  { %v5030_v58 = vmul.f32 %v1438_v1, %v4736_v13  ;;  %v1551_v9 = vpop.f32.mrb[96].mxu1  ;;  %v1440_v3 = vpop.f32.mrb[97].mxu0 }
 0x294   :  { %v5033_v8 = vmul.f32 %v1551_v9, %v4740_v15  ;;  %v5036_v46 = vmul.f32 %v1440_v3, %v4738_v14  ;;  %v1553_v11 = vpop.f32.mrb[97].mxu1  ;;  %v1442_v54 = vpop.f32.mrb[98].mxu0 }
 0x295   :  { %v5039_v10 = vmul.f32 %v1553_v11, %v4744_v17  ;;  %v5042_v12 = vmul.f32 %v1442_v54, %v4742_v16  ;;  %v1555_v62 = vpop.f32.mrb[98].mxu1  ;;  %v1444_v7 = vpop.f32.mrb[99].mxu0 }
 0x296   :  { %v5045_v13 = vmul.f32 %v1555_v62, %v4748_v19  ;;  %v5048_v1 = vmul.f32 %v1444_v7, %v4746_v18  ;;  %v1557_v15 = vpop.f32.mrb[99].mxu1 }
 0x297   :  { %v5051_v14 = vmul.f32 %v1557_v15, %v4750_v20 }
 0x29a   :  { %v1448_v9 = vpop.f32.mrb[100].mxu0 }
 0x29b   :  { %v5054_v3 = vmul.f32 %v1448_v9, %v4757_v21  ;;  %v1561_v17 = vpop.f32.mrb[100].mxu1  ;;  %v1450_v11 = vpop.f32.mrb[101].mxu0 }
 0x29c   :  { %v5057_v16 = vmul.f32 %v1561_v17, %v4761_v23  ;;  %v5060_v54 = vmul.f32 %v1450_v11, %v4759_v22  ;;  %v1563_v19 = vpop.f32.mrb[101].mxu1  ;;  %v1452_v62 = vpop.f32.mrb[102].mxu0 }
 0x29d   :  { %v5063_v18 = vmul.f32 %v1563_v19, %v4765_v25  ;;  %v5066_v20 = vmul.f32 %v1452_v62, %v4763_v24  ;;  %v1565_v7 = vpop.f32.mrb[102].mxu1  ;;  %v1454_v15 = vpop.f32.mrb[103].mxu0 }
 0x29e   :  { %v5069_v21 = vmul.f32 %v1565_v7, %v4769_v27  ;;  %v5072_v9 = vmul.f32 %v1454_v15, %v4767_v26  ;;  %v1567_v23 = vpop.f32.mrb[103].mxu1  ;;  %v6028_v15 = vld [vmem:[#allocation12_spill] sm:$0xff] }
 0x29f   :  { %6020 = vst [vmem:[#allocation88_spill] sm:$0xff] %v5066_v20  ;;  %v5075_v22 = vmul.f32 %v1567_v23, %v4771_v28 }
 0x2a0   :  { %6021 = vst [vmem:[#allocation89_spill] sm:$0xff] %v5069_v21  ;;  %6022 = vst [vmem:[#allocation90_spill] sm:$0xff] %v5072_v9 }
 0x2a1   :  { %6023 = vst [vmem:[#allocation91_spill] sm:$0xff] %v5075_v22 }
 0x2a2   :  { %v1458_v17 = vpop.f32.mrb[104].mxu0 }
 0x2a3   :  { %v5078_v11 = vmul.f32 %v1458_v17, %v4773_v29  ;;  %v1571_v25 = vpop.f32.mrb[104].mxu1  ;;  %v1460_v19 = vpop.f32.mrb[105].mxu0  ;;  %v6030_v29 = vld [vmem:[#allocation14_spill] sm:$0xff] }
 0x2a4   :  { %v5081_v24 = vmul.f32 %v1571_v25, %v4777_v31  ;;  %v5084_v62 = vmul.f32 %v1460_v19, %v4775_v30  ;;  %v1573_v27 = vpop.f32.mrb[105].mxu1  ;;  %v1462_v7 = vpop.f32.mrb[106].mxu0  ;;  %v6034_v25 = vld [vmem:[#allocation15_spill] sm:$0xff] }
 0x2a5   :  { %6024 = vst [vmem:[#allocation92_spill] sm:$0xff] %v5078_v11  ;;  %v5087_v26 = vmul.f32 %v1573_v27, %v4781_v33  ;;  %v5090_v28 = vmul.f32 %v1462_v7, %v6028_v15  ;;  %v1575_v23 = vpop.f32.mrb[106].mxu1  ;;  %v1464_v22 = vpop.f32.mrb[107].mxu0  ;;  %v6032_v11 = vld [vmem:[#allocation13_spill] sm:$0xff]  ;;  %v6038_v7 = vld [vmem:[#allocation18_spill] sm:$0xff] }
 0x2a6   :  { %6025 = vst [vmem:[#allocation93_spill] sm:$0xff] %v5081_v24  ;;  %6026 = vst [vmem:[#allocation94_spill] sm:$0xff] %v5084_v62  ;;  %v5093_v17 = vmul.f32 %v1575_v23, %v6030_v29  ;;  %v5096_v9 = vmul.f32 %v1464_v22, %v6032_v11  ;;  %v1577_v31 = vpop.f32.mrb[107].mxu1  ;;  %v6036_v62 = vld [vmem:[#allocation16_spill] sm:$0xff] }
 0x2a7   :  { %6027 = vst [vmem:[#allocation95_spill] sm:$0xff] %v5087_v26  ;;  %6029 = vst [vmem:[#allocation12_spill] sm:$0xff] %v5090_v28  ;;  %v5099_v30 = vmul.f32 %v1577_v31, %v6034_v25  ;;  %v6040_v28 = vld [vmem:[#allocation17_spill] sm:$0xff]  ;;  %v6042_v22 = vld [vmem:[#allocation20_spill] sm:$0xff] }
 0x2a8   :  { %6031 = vst [vmem:[#allocation14_spill] sm:$0xff] %v5093_v17  ;;  %6033 = vst [vmem:[#allocation13_spill] sm:$0xff] %v5096_v9  ;;  %v6044_v9 = vld [vmem:[#allocation19_spill] sm:$0xff] }
 0x2a9   :  { %6035 = vst [vmem:[#allocation15_spill] sm:$0xff] %v5099_v30 }
 0x2aa   :  { %v1468_v19 = vpop.f32.mrb[108].mxu0 }
 0x2ab   :  { %v5102_v24 = vmul.f32 %v1468_v19, %v6036_v62  ;;  %v1581_v33 = vpop.f32.mrb[108].mxu1  ;;  %v1470_v27 = vpop.f32.mrb[109].mxu0  ;;  %v6046_v62 = vld [vmem:[#allocation22_spill] sm:$0xff] }
 0x2ac   :  { %v5105_v15 = vmul.f32 %v1581_v33, %v6038_v7  ;;  %v5108_v26 = vmul.f32 %v1470_v27, %v6040_v28  ;;  %v1583_v23 = vpop.f32.mrb[109].mxu1  ;;  %v1472_v29 = vpop.f32.mrb[110].mxu0  ;;  %v6050_v7 = vld [vmem:[#allocation23_spill] sm:$0xff] }
 0x2ad   :  { %6037 = vst [vmem:[#allocation16_spill] sm:$0xff] %v5102_v24  ;;  %v5111_v11 = vmul.f32 %v1583_v23, %v6042_v22  ;;  %v5114_v31 = vmul.f32 %v1472_v29, %v6044_v9  ;;  %v1585_v25 = vpop.f32.mrb[110].mxu1  ;;  %v1474_v30 = vpop.f32.mrb[111].mxu0  ;;  %v6048_v24 = vld [vmem:[#allocation21_spill] sm:$0xff] }
 0x2ae   :  { %6039 = vst [vmem:[#allocation18_spill] sm:$0xff] %v5105_v15  ;;  %6041 = vst [vmem:[#allocation17_spill] sm:$0xff] %v5108_v26  ;;  %v5117_v19 = vmul.f32 %v1585_v25, %v6046_v62  ;;  %v5120_v17 = vmul.f32 %v1474_v30, %v6048_v24  ;;  %v1587_v33 = vpop.f32.mrb[111].mxu1  ;;  %v6052_v26 = vld [vmem:[#allocation24_spill] sm:$0xff]  ;;  %v6054_v29 = vld [vmem:[#allocation25_spill] sm:$0xff] }
 0x2af   :  { %6043 = vst [vmem:[#allocation20_spill] sm:$0xff] %v5111_v11  ;;  %6045 = vst [vmem:[#allocation19_spill] sm:$0xff] %v5114_v31  ;;  %v5123_v28 = vmul.f32 %v1587_v33, %v6050_v7  ;;  %v6053_v11 = vld [vmem:[#allocation26_spill] sm:$0xff]  ;;  %v6055_v62 = vld [vmem:[#allocation28_spill] sm:$0xff] }
 0x2b0   :  { %6047 = vst [vmem:[#allocation22_spill] sm:$0xff] %v5117_v19  ;;  %6049 = vst [vmem:[#allocation21_spill] sm:$0xff] %v5120_v17  ;;  %v6056_v30 = vld [vmem:[#allocation27_spill] sm:$0xff] }
 0x2b1   :  { %6051 = vst [vmem:[#allocation23_spill] sm:$0xff] %v5123_v28 }
 0x2b2   :  { %v1624_v27 = vpop.f32.mrb[112].mxu0 }
 0x2b3   :  { %v1880_v15 = vmul.f32 %v1624_v27, %v6052_v26  ;;  %v1737_v23 = vpop.f32.mrb[112].mxu1  ;;  %v1626_v22 = vpop.f32.mrb[113].mxu0  ;;  %v6057_v27 = vld [vmem:[#allocation30_spill] sm:$0xff] }
 0x2b4   :  { %v1882_v9 = vmul.f32 %v1737_v23, %v6053_v11  ;;  %v1881_v31 = vmul.f32 %v1626_v22, %v6054_v29  ;;  %v1739_v21 = vpop.f32.mrb[113].mxu1  ;;  %v1628_v20 = vpop.f32.mrb[114].mxu0  ;;  %v6058_v11 = vld [vmem:[#allocation29_spill] sm:$0xff] }
 0x2b5   :  { %v1944_v25 = vadd.f32 %v1880_v15, %v4934_v0  ;;  %v1883_v24 = vmul.f32 %v1739_v21, %v6055_v62  ;;  %v1884_v17 = vmul.f32 %v1628_v20, %v6056_v30  ;;  %v1741_v19 = vpop.f32.mrb[114].mxu1  ;;  %v1630_v33 = vpop.f32.mrb[115].mxu0  ;;  %v6059_v21 = vld [vmem:[#allocation31_spill] sm:$0xff] }
 0x2b6   :  { %v5132_v7 = vadd.f32 %v1882_v9, %v4937_v36  ;;  %v1945_v26 = vadd.f32 %v1881_v31, %v4940_v37  ;;  %v1886_v28 = vmul.f32 %v1741_v19, %v6057_v27  ;;  %v1885_v23 = vmul.f32 %v1630_v33, %v6058_v11  ;;  %v1743_v22 = vpop.f32.mrb[115].mxu1  ;;  %v6062_v33 = vld [vmem:[#allocation33_spill] sm:$0xff]  ;;  %v6063_v11 = vld [vmem:[#allocation36_spill] sm:$0xff] }
 0x2b7   :  { %v5138_v29 = vadd.f32 %v1883_v24, %v4943_v40  ;;  %v1948_v0 = vadd.f32 %v1884_v17, %v4946_v41  ;;  %v1887_v15 = vmul.f32 %v1743_v22, %v6059_v21  ;;  %v6060_v40 = vld [vmem:[#allocation32_spill] sm:$0xff]  ;;  %v6064_v22 = vld [vmem:[#allocation35_spill] sm:$0xff] }
 0x2b8   :  { %v5143_v20 = vadd.f32 %v1886_v28, %v4949_v44  ;;  %v1949_v36 = vadd.f32 %v1885_v23, %v4952_v43  ;;  %v6061_v44 = vld [vmem:[#allocation34_spill] sm:$0xff] }
 0x2b9   :  { %v2008_v9 = vpack.c.bf16 %v1948_v0, %v1944_v25  ;;  %v5147_v37 = vadd.f32 %v1887_v15, %v4955_v45 }
 0x2ba   :  { %v2010_v31 = vpack.c.bf16 %v5143_v20, %v5132_v7  ;;  %v1634_v19 = vpop.f32.mrb[116].mxu0  ;;  %v2009_v62 = vpack.c.bf16 %v1949_v36, %v1945_v26  ;;  %v5363_v7 = vld [vmem:[#allocation5 + $0x10] sm:$0xff]   ;;  %v4179_v20 = vld [vmem:[#allocation5 + $0x18] sm:$0xff]  }
 0x2bb   :  { %v1888_v24 = vmul.f32 %v1634_v19, %v6060_v40  ;;  %v1747_v30 = vpop.f32.mrb[116].mxu1  ;;  %v1636_v41 = vpop.f32.mrb[117].mxu0  ;;  %v2011_v17 = vpack.c.bf16 %v5147_v37, %v5138_v29  ;;  %v6065_v19 = vld [vmem:[#allocation38_spill] sm:$0xff] }
 0x2bc   :  { %v1890_v28 = vmul.f32 %v1747_v30, %v6061_v44  ;;  %v1889_v43 = vmul.f32 %v1636_v41, %v6062_v33  ;;  %v1749_v25 = vpop.f32.mrb[117].mxu1  ;;  %v1638_v27 = vpop.f32.mrb[118].mxu0  ;;  %2168 = vmatprep.subr.bf16.mxu1 %v2009_v62  ;;  %v6066_v30 = vld [vmem:[#allocation37_spill] sm:$0xff] }
 0x2bd   :  { %v1952_v45 = vadd.f32 %v1888_v24, %v4958_v35  ;;  %v1891_v23 = vmul.f32 %v1749_v25, %v6063_v11  ;;  %v1892_v26 = vmul.f32 %v1638_v27, %v6064_v22  ;;  %v1751_v0 = vpop.f32.mrb[118].mxu1  ;;  %v1640_v21 = vpop.f32.mrb[119].mxu0  ;;  %2169 = vmatpush1.bf16.msra.mxu1 %v2008_v9  ;;  %v6067_v24 = vld [vmem:[#allocation39_spill] sm:$0xff] }
 0x2be   :  { %v5160_v15 = vadd.f32 %v1890_v28, %v4961_v47  ;;  %v1953_v36 = vadd.f32 %v1889_v43, %v4964_v39  ;;  %v1894_v40 = vmul.f32 %v1751_v0, %v6065_v19  ;;  %v1893_v41 = vmul.f32 %v1640_v21, %v6066_v30  ;;  %v1753_v44 = vpop.f32.mrb[119].mxu1  ;;  %v6070_v0 = vld [vmem:[#allocation41_spill] sm:$0xff]  ;;  %v6071_v19 = vld [vmem:[#allocation44_spill] sm:$0xff]  ;;  %v6072_v30 = vld [vmem:[#allocation43_spill] sm:$0xff] }
 0x2bf   :  { %v5166_v62 = vadd.f32 %v1891_v23, %v4967_v49  ;;  %v1956_v35 = vadd.f32 %v1892_v26, %v4970_v51  ;;  %v1895_v33 = vmul.f32 %v1753_v44, %v6067_v24  ;;  %v6068_v49 = vld [vmem:[#allocation40_spill] sm:$0xff] }
 0x2c0   :  { %v5171_v25 = vadd.f32 %v1894_v40, %v4973_v52  ;;  %v1957_v47 = vadd.f32 %v1893_v41, %v4976_v34  ;;  %v6069_v52 = vld [vmem:[#allocation42_spill] sm:$0xff] }
 0x2c1   :  { %v2012_v9 = vpack.c.bf16 %v1956_v35, %v1952_v45  ;;  %v5175_v39 = vadd.f32 %v1895_v33, %v4979_v53  ;;  %v6073_v33 = vld [vmem:[#allocation46_spill] sm:$0xff] }
 0x2c2   :  { %v2014_v28 = vpack.c.bf16 %v5171_v25, %v5160_v15  ;;  %v1644_v43 = vpop.f32.mrb[120].mxu0  ;;  %v2013_v27 = vpack.c.bf16 %v1957_v47, %v1953_v36  ;;  %v2634_v15 = vld [vmem:[#allocation7 + $0x80] sm:$0xff] }
 0x2c3   :  { %v1896_v11 = vmul.f32 %v1644_v43, %v6068_v49  ;;  %v1757_v23 = vpop.f32.mrb[120].mxu1  ;;  %v1646_v51 = vpop.f32.mrb[121].mxu0  ;;  %v2015_v22 = vpack.c.bf16 %v5175_v39, %v5166_v62  ;;  %v6074_v43 = vld [vmem:[#allocation45_spill] sm:$0xff] }
 0x2c4   :  { %v1898_v26 = vmul.f32 %v1757_v23, %v6069_v52  ;;  %v1897_v34 = vmul.f32 %v1646_v51, %v6070_v0  ;;  %v1759_v45 = vpop.f32.mrb[121].mxu1  ;;  %v1648_v21 = vpop.f32.mrb[122].mxu0  ;;  %2170 = vmatprep.subr.bf16.mxu1 %v2013_v27  ;;  %v4181_v39 = vld [vmem:[#allocation5 + $0x28] sm:$0xff]  }
 0x2c5   :  { %v1960_v53 = vadd.f32 %v1896_v11, %v4982_v38  ;;  %v1899_v40 = vmul.f32 %v1759_v45, %v6071_v19  ;;  %v1900_v36 = vmul.f32 %v1648_v21, %v6072_v30  ;;  %v1761_v41 = vpop.f32.mrb[122].mxu1  ;;  %v1650_v44 = vpop.f32.mrb[123].mxu0  ;;  %2171 = vmatpush1.bf16.msra.mxu1 %v2012_v9  ;;  %v6075_v11 = vld [vmem:[#allocation47_spill] sm:$0xff]  ;;  %v6078_v30 = vld [vmem:[#allocation49_spill] sm:$0xff] }
 0x2c6   :  { %v5188_v35 = vadd.f32 %v1898_v26, %v4985_v55  ;;  %v1961_v24 = vadd.f32 %v1897_v34, %v4988_v42  ;;  %v1902_v47 = vmul.f32 %v1761_v41, %v6073_v33  ;;  %v1901_v49 = vmul.f32 %v1650_v44, %v6074_v43  ;;  %v1763_v23 = vpop.f32.mrb[123].mxu1  ;;  %v6079_v41 = vld [vmem:[#allocation52_spill] sm:$0xff]  ;;  %v6080_v33 = vld [vmem:[#allocation51_spill] sm:$0xff] }
 0x2c7   :  { %v5194_v27 = vadd.f32 %v1899_v40, %v4991_v57  ;;  %v1964_v38 = vadd.f32 %v1900_v36, %v4994_v59  ;;  %v1903_v51 = vmul.f32 %v1763_v23, %v6075_v11  ;;  %v6076_v57 = vld [vmem:[#allocation48_spill] sm:$0xff] }
 0x2c8   :  { %v5199_v52 = vadd.f32 %v1902_v47, %v4997_v60  ;;  %v1965_v55 = vadd.f32 %v1901_v49, %v5000_v48  ;;  %v6077_v60 = vld [vmem:[#allocation50_spill] sm:$0xff] }
 0x2c9   :  { %v2016_v9 = vpack.c.bf16 %v1964_v38, %v1960_v53  ;;  %v5203_v42 = vadd.f32 %v1903_v51, %v5003_v61  ;;  %v6081_v38 = vld [vmem:[#allocation54_spill] sm:$0xff]  ;;  %v6082_v51 = vld [vmem:[#allocation53_spill] sm:$0xff] }
 0x2ca   :  { %v2018_v26 = vpack.c.bf16 %v5199_v52, %v5188_v35  ;;  %v1654_v0 = vpop.f32.mrb[124].mxu0  ;;  %v2017_v34 = vpack.c.bf16 %v1965_v55, %v1961_v24  ;;  %v4182_v52 = vld [vmem:[#allocation5 + $0x30] sm:$0xff]  }
 0x2cb   :  { %v1904_v45 = vmul.f32 %v1654_v0, %v6076_v57  ;;  %v1767_v21 = vpop.f32.mrb[124].mxu1  ;;  %v1656_v59 = vpop.f32.mrb[125].mxu0  ;;  %v2019_v19 = vpack.c.bf16 %v5203_v42, %v5194_v27  ;;  %v6083_v57 = vld [vmem:[#allocation55_spill] sm:$0xff] }
 0x2cc   :  { %v1906_v40 = vmul.f32 %v1767_v21, %v6077_v60  ;;  %v1905_v48 = vmul.f32 %v1656_v59, %v6078_v30  ;;  %v1769_v53 = vpop.f32.mrb[125].mxu1  ;;  %v1658_v36 = vpop.f32.mrb[126].mxu0  ;;  %2172 = vmatprep.subr.bf16.mxu1 %v2017_v34  ;;  %v4183_v42 = vld [vmem:[#allocation5 + $0x38] sm:$0xff]  }
 0x2cd   :  { %v1968_v61 = vadd.f32 %v1904_v45, %v5006_v50  ;;  %v1907_v44 = vmul.f32 %v1769_v53, %v6079_v41  ;;  %v1908_v24 = vmul.f32 %v1658_v36, %v6080_v33  ;;  %v1771_v47 = vpop.f32.mrb[126].mxu1  ;;  %v1660_v43 = vpop.f32.mrb[127].mxu0  ;;  %2173 = vmatpush1.bf16.msra.mxu1 %v2016_v9  ;;  %v6086_v41 = vld [vmem:[#allocation57_spill] sm:$0xff]  ;;  %v6087_v33 = vld [vmem:[#allocation60_spill] sm:$0xff] }
 0x2ce   :  { %v5216_v49 = vadd.f32 %v1906_v40, %v5009_v63  ;;  %v1969_v23 = vadd.f32 %v1905_v48, %v5012_v32  ;;  %v1910_v11 = vmul.f32 %v1771_v47, %v6081_v38  ;;  %v1909_v55 = vmul.f32 %v1660_v43, %v6082_v51  ;;  %v1773_v0 = vpop.f32.mrb[127].mxu1  ;;  %v6088_v47 = vld [vmem:[#allocation59_spill] sm:$0xff] }
 0x2cf   :  { %v5222_v34 = vadd.f32 %v1907_v44, %v5015_v2  ;;  %v1972_v50 = vadd.f32 %v1908_v24, %v5018_v4  ;;  %v1911_v45 = vmul.f32 %v1773_v0, %v6083_v57  ;;  %v6084_v2 = vld [vmem:[#allocation56_spill] sm:$0xff] }
 0x2d0   :  { %v5227_v21 = vadd.f32 %v1910_v11, %v5021_v5  ;;  %v1973_v63 = vadd.f32 %v1909_v55, %v5024_v56  ;;  %v6085_v5 = vld [vmem:[#allocation58_spill] sm:$0xff] }
 0x2d1   :  { %v2020_v9 = vpack.c.bf16 %v1972_v50, %v1968_v61  ;;  %v5231_v32 = vadd.f32 %v1911_v45, %v5027_v6  ;;  %v6089_v55 = vld [vmem:[#allocation62_spill] sm:$0xff]  ;;  %v6090_v50 = vld [vmem:[#allocation61_spill] sm:$0xff] }
 0x2d2   :  { %v2022_v59 = vpack.c.bf16 %v5227_v21, %v5216_v49  ;;  %v1664_v60 = vpop.f32.mrb[128].mxu0  ;;  %v2021_v40 = vpack.c.bf16 %v1973_v63, %v1969_v23  ;;  %v4186_v49 = vld [vmem:[#allocation5 + $0x50] sm:$0xff]   ;;  %v4188_v21 = vld [vmem:[#allocation5 + $0x60] sm:$0xff]  }
 0x2d3   :  { %v1912_v30 = vmul.f32 %v1664_v60, %v6084_v2  ;;  %v1777_v48 = vpop.f32.mrb[128].mxu1  ;;  %v1666_v4 = vpop.f32.mrb[129].mxu0  ;;  %v2023_v53 = vpack.c.bf16 %v5231_v32, %v5222_v34  ;;  %v6091_v60 = vld [vmem:[#allocation63_spill] sm:$0xff]  ;;  %v5392_v32 = vld [vmem:[#allocation5 + $0x68] sm:$0xff]  }
 0x2d4   :  { %v1914_v36 = vmul.f32 %v1777_v48, %v6085_v5  ;;  %v1913_v56 = vmul.f32 %v1666_v4, %v6086_v41  ;;  %v1779_v61 = vpop.f32.mrb[129].mxu1  ;;  %v1668_v44 = vpop.f32.mrb[130].mxu0  ;;  %2174 = vmatprep.subr.bf16.mxu1 %v2021_v40  ;;  %v4187_v34 = vld [vmem:[#allocation5 + $0x58] sm:$0xff]  }
 0x2d5   :  { %v1976_v6 = vadd.f32 %v1912_v30, %v5030_v58  ;;  %v1915_v24 = vmul.f32 %v1779_v61, %v6087_v33  ;;  %v1916_v43 = vmul.f32 %v1668_v44, %v6088_v47  ;;  %v1781_v23 = vpop.f32.mrb[130].mxu1  ;;  %v1670_v38 = vpop.f32.mrb[131].mxu0  ;;  %2175 = vmatpush1.bf16.msra.mxu1 %v2020_v9  ;;  %v6094_v61 = vld [vmem:[#allocation65_spill] sm:$0xff]  ;;  %v6095_v33 = vld [vmem:[#allocation68_spill] sm:$0xff]  ;;  %v6096_v47 = vld [vmem:[#allocation67_spill] sm:$0xff] }
 0x2d6   :  { %v5244_v11 = vadd.f32 %v1914_v36, %v5033_v8  ;;  %v1977_v51 = vadd.f32 %v1913_v56, %v5036_v46  ;;  %v1918_v0 = vmul.f32 %v1781_v23, %v6089_v55  ;;  %v1917_v57 = vmul.f32 %v1670_v38, %v6090_v50  ;;  %v1783_v45 = vpop.f32.mrb[131].mxu1 }
 0x2d7   :  { %v5250_v63 = vadd.f32 %v1915_v24, %v5039_v10  ;;  %v1980_v58 = vadd.f32 %v1916_v43, %v5042_v12  ;;  %v1919_v40 = vmul.f32 %v1783_v45, %v6091_v60  ;;  %v6092_v10 = vld [vmem:[#allocation64_spill] sm:$0xff] }
 0x2d8   :  { %v5255_v2 = vadd.f32 %v1918_v0, %v5045_v13  ;;  %v1981_v8 = vadd.f32 %v1917_v57, %v5048_v1  ;;  %v6093_v13 = vld [vmem:[#allocation66_spill] sm:$0xff]  ;;  %v6098_v57 = vld [vmem:[#allocation69_spill] sm:$0xff] }
 0x2d9   :  { %v2024_v9 = vpack.c.bf16 %v1980_v58, %v1976_v6  ;;  %v5259_v46 = vadd.f32 %v1919_v40, %v5051_v14  ;;  %v6097_v0 = vld [vmem:[#allocation70_spill] sm:$0xff] }
 0x2da   :  { %v2026_v30 = vpack.c.bf16 %v5255_v2, %v5244_v11  ;;  %v1674_v48 = vpop.f32.mrb[132].mxu0  ;;  %v2025_v4 = vpack.c.bf16 %v1981_v8, %v1977_v51  ;;  %v6100_v8 = vld [vmem:[#allocation71_spill] sm:$0xff]  ;;  %v2619_v11 = vld [vmem:[#allocation7 + $0x8] sm:$0xff] }
 0x2db   :  { %v1920_v5 = vmul.f32 %v1674_v48, %v6092_v10  ;;  %v1787_v36 = vpop.f32.mrb[132].mxu1  ;;  %v1676_v12 = vpop.f32.mrb[133].mxu0  ;;  %v2027_v41 = vpack.c.bf16 %v5259_v46, %v5250_v63  ;;  %v2635_v63 = vld [vmem:[#allocation7 + $0x88] sm:$0xff] }
 0x2dc   :  { %v1922_v56 = vmul.f32 %v1787_v36, %v6093_v13  ;;  %v1921_v1 = vmul.f32 %v1676_v12, %v6094_v61  ;;  %v1789_v44 = vpop.f32.mrb[133].mxu1  ;;  %v1678_v6 = vpop.f32.mrb[134].mxu0  ;;  %2176 = vmatprep.subr.bf16.mxu1 %v2025_v4  ;;  %v6101_v4 = vld [vmem:[#allocation89_spill] sm:$0xff]  ;;  %v6103_v36 = vld [vmem:[#allocation91_spill] sm:$0xff]  ;;  %v3967_v2 = vcombine.high %v2619_v11, %v2635_v63 }
 0x2dd   :  { %v1984_v14 = vadd.f32 %v1920_v5, %v5054_v3  ;;  %v1923_v24 = vmul.f32 %v1789_v44, %v6095_v33  ;;  %v1924_v43 = vmul.f32 %v1678_v6, %v6096_v47  ;;  %v1791_v23 = vpop.f32.mrb[134].mxu1  ;;  %v1680_v38 = vpop.f32.mrb[135].mxu0  ;;  %2177 = vmatpush1.bf16.msra.mxu1 %v2024_v9  ;;  %v6099_v3 = vld [vmem:[#allocation88_spill] sm:$0xff]  ;;  %v6102_v9 = vld [vmem:[#allocation90_spill] sm:$0xff]  ;;  %v6106_v47 = vld [vmem:[#allocation73_spill] sm:$0xff] }
 0x2de   :  { %v5272_v51 = vadd.f32 %v1922_v56, %v5057_v16  ;;  %v1985_v55 = vadd.f32 %v1921_v1, %v5060_v54  ;;  %v1926_v50 = vmul.f32 %v1791_v23, %v6097_v0  ;;  %v1925_v45 = vmul.f32 %v1680_v38, %v6098_v57  ;;  %v1793_v58 = vpop.f32.mrb[135].mxu1  ;;  %v6105_v33 = vld [vmem:[#allocation74_spill] sm:$0xff]  ;;  %v6107_v38 = vld [vmem:[#allocation92_spill] sm:$0xff]  ;;  %v6135_v6 = vld [vmem:[#allocation23_spill] sm:$0xff] }
 0x2df   :  { %v5278_v60 = vadd.f32 %v1923_v24, %v5063_v18  ;;  %v1988_v40 = vadd.f32 %v1924_v43, %v6099_v3  ;;  %v1927_v48 = vmul.f32 %v1793_v58, %v6100_v8  ;;  %v6104_v18 = vld [vmem:[#allocation72_spill] sm:$0xff] }
 0x2e0   :  { %v5283_v10 = vadd.f32 %v1926_v50, %v6101_v4  ;;  %v1989_v16 = vadd.f32 %v1925_v45, %v6102_v9  ;;  %v6108_v50 = vld [vmem:[#allocation76_spill] sm:$0xff]  ;;  %v6109_v45 = vld [vmem:[#allocation75_spill] sm:$0xff]  ;;  %v6112_v9 = vld [vmem:[#allocation78_spill] sm:$0xff] }
 0x2e1   :  { %v2028_v5 = vpack.c.bf16 %v1988_v40, %v1984_v14  ;;  %v5287_v54 = vadd.f32 %v1927_v48, %v6103_v36  ;;  %v6110_v40 = vld [vmem:[#allocation93_spill] sm:$0xff]  ;;  %v6111_v48 = vld [vmem:[#allocation94_spill] sm:$0xff] }
 0x2e2   :  { %v1684_v13 = vpop.f32.mrb[136].mxu0  ;;  %v2029_v56 = vpack.c.bf16 %v1989_v16, %v1985_v55  ;;  %v6113_v36 = vld [vmem:[#allocation77_spill] sm:$0xff]  ;;  %v6138_v37 = vpack.c.bf16 %v5283_v10, %v5272_v51 }
 0x2e3   :  { %v1928_v61 = vmul.f32 %v1684_v13, %v6104_v18  ;;  %v1797_v1 = vpop.f32.mrb[136].mxu1  ;;  %v1686_v44 = vpop.f32.mrb[137].mxu0  ;;  %v6137_v29 = vpack.c.bf16 %v5287_v54, %v5278_v60  ;;  %v3966_v54 = vcombine.low %v2619_v11, %v2635_v63 }
 0x2e4   :  { %v1930_v24 = vmul.f32 %v1797_v1, %v6105_v33  ;;  %v1929_v43 = vmul.f32 %v1686_v44, %v6106_v47  ;;  %v1799_v14 = vpop.f32.mrb[137].mxu1  ;;  %v1688_v23 = vpop.f32.mrb[138].mxu0  ;;  %2178 = vmatprep.subr.bf16.mxu1 %v2029_v56  ;;  %v6114_v56 = vld [vmem:[#allocation95_spill] sm:$0xff] }
 0x2e5   :  { %v1992_v0 = vadd.f32 %v1928_v61, %v6107_v38  ;;  %v1931_v57 = vmul.f32 %v1799_v14, %v6108_v50  ;;  %v1932_v55 = vmul.f32 %v1688_v23, %v6109_v45  ;;  %v1801_v58 = vpop.f32.mrb[138].mxu1  ;;  %v1690_v3 = vpop.f32.mrb[139].mxu0  ;;  %2179 = vmatpush1.bf16.msra.mxu1 %v2028_v5  ;;  %v6115_v61 = vld [vmem:[#allocation12_spill] sm:$0xff]  ;;  %v6116_v33 = vld [vmem:[#allocation79_spill] sm:$0xff]  ;;  %v6117_v14 = vld [vmem:[#allocation14_spill] sm:$0xff] }
 0x2e6   :  { %v5300_v8 = vadd.f32 %v1930_v24, %v6110_v40  ;;  %v1993_v4 = vadd.f32 %v1929_v43, %v6111_v48  ;;  %v1934_v16 = vmul.f32 %v1801_v58, %v6112_v9  ;;  %v1933_v13 = vmul.f32 %v1690_v3, %v6113_v36  ;;  %v1803_v18 = vpop.f32.mrb[139].mxu1  ;;  %v6118_v5 = vld [vmem:[#allocation13_spill] sm:$0xff]  ;;  %v6119_v50 = vld [vmem:[#allocation15_spill] sm:$0xff]  ;;  %v6120_v40 = vld [vmem:[#allocation80_spill] sm:$0xff] }
 0x2e7   :  { %v5306_v1 = vadd.f32 %v1931_v57, %v6114_v56  ;;  %v1996_v44 = vadd.f32 %v1932_v55, %v6115_v61  ;;  %v1935_v47 = vmul.f32 %v1803_v18, %v6116_v33  ;;  %v6121_v36 = vld [vmem:[#allocation82_spill] sm:$0xff]  ;;  %v6124_v33 = vld [vmem:[#allocation84_spill] sm:$0xff] }
 0x2e8   :  { %v5311_v23 = vadd.f32 %v1934_v16, %v6117_v14  ;;  %v1997_v24 = vadd.f32 %v1933_v13, %v6118_v5  ;;  %v6122_v16 = vld [vmem:[#allocation81_spill] sm:$0xff]  ;;  %v6126_v5 = vld [vmem:[#allocation18_spill] sm:$0xff] }
 0x2e9   :  { %v2032_v38 = vpack.c.bf16 %v1996_v44, %v1992_v0  ;;  %v1999_v43 = vadd.f32 %v1935_v47, %v6119_v50  ;;  %v6123_v0 = vld [vmem:[#allocation16_spill] sm:$0xff]  ;;  %v6127_v50 = vld [vmem:[#allocation17_spill] sm:$0xff] }
 0x2ea   :  { %v2034_v45 = vpack.c.bf16 %v5311_v23, %v5300_v8  ;;  %v1694_v58 = vpop.f32.mrb[140].mxu0  ;;  %v2033_v3 = vpack.c.bf16 %v1997_v24, %v1993_v4  ;;  %v6125_v8 = vld [vmem:[#allocation83_spill] sm:$0xff] }
 0x2eb   :  { %v1936_v57 = vmul.f32 %v1694_v58, %v6120_v40  ;;  %v1807_v48 = vpop.f32.mrb[140].mxu1  ;;  %v1696_v9 = vpop.f32.mrb[141].mxu0  ;;  %v2035_v55 = vpack.c.bf16 %v1999_v43, %v5306_v1  ;;  %v6128_v43 = vld [vmem:[#allocation86_spill] sm:$0xff]  ;;  %v6129_v40 = vld [vmem:[#allocation85_spill] sm:$0xff] }
 0x2ec   :  { %v1938_v18 = vmul.f32 %v1807_v48, %v6121_v36  ;;  %v1937_v56 = vmul.f32 %v1696_v9, %v6122_v16  ;;  %v1809_v61 = vpop.f32.mrb[141].mxu1  ;;  %v1698_v13 = vpop.f32.mrb[142].mxu0  ;;  %2180 = vmatprep.subr.bf16.mxu1 %v2033_v3  ;;  %v6130_v36 = vld [vmem:[#allocation20_spill] sm:$0xff]  ;;  %v6131_v16 = vld [vmem:[#allocation19_spill] sm:$0xff] }
 0x2ed   :  { %v2000_v44 = vadd.f32 %v1936_v57, %v6123_v0  ;;  %v1939_v47 = vmul.f32 %v1809_v61, %v6124_v33  ;;  %v1940_v14 = vmul.f32 %v1698_v13, %v6125_v8  ;;  %v1811_v4 = vpop.f32.mrb[142].mxu1  ;;  %v1700_v23 = vpop.f32.mrb[143].mxu0  ;;  %2181 = vmatpush1.bf16.msra.mxu1 %v2032_v38  ;;  %v6132_v0 = vld [vmem:[#allocation87_spill] sm:$0xff]  ;;  %v6133_v33 = vld [vmem:[#allocation22_spill] sm:$0xff]  ;;  %v6134_v8 = vld [vmem:[#allocation21_spill] sm:$0xff] }
 0x2ee   :  { %v2002_v24 = vadd.f32 %v1938_v18, %v6126_v5  ;;  %v2001_v1 = vadd.f32 %v1937_v56, %v6127_v50  ;;  %v1942_v58 = vmul.f32 %v1811_v4, %v6128_v43  ;;  %v1941_v48 = vmul.f32 %v1700_v23, %v6129_v40  ;;  %v1813_v9 = vpop.f32.mrb[143].mxu1  ;;  %v5334_v4 = vld [vmem:[#allocation5] sm:$0xff]   ;;  %v5431_v40 = vld [vmem:[#allocation7 + $0x10] sm:$0xff] }
 0x2ef   :  { %v2003_v3 = vadd.f32 %v1939_v47, %v6130_v36  ;;  %v2004_v57 = vadd.f32 %v1940_v14, %v6131_v16  ;;  %v1943_v61 = vmul.f32 %v1813_v9, %v6132_v0 }
 0x2f0   :  { %v2006_v13 = vadd.f32 %v1942_v58, %v6133_v33  ;;  %v2005_v12 = vadd.f32 %v1941_v48, %v6134_v8  ;;  %v5433_v48 = vld [vmem:[#allocation7 + $0x90] sm:$0xff] }
 0x2f1   :  { %v2036_v38 = vpack.c.bf16 %v2004_v57, %v2000_v44  ;;  %v2007_v18 = vadd.f32 %v1943_v61, %v6135_v6  ;;  %v6136_v44 = vmov 0   ;;  %v2651_v6 = vld [vmem:[#allocation7 + $0x108] sm:$0xff]  ;;  %v3969_v9 = vcombine.high %v5431_v40, %v5433_v48 }
 0x2f2   :  { %v2038_v5 = vpack.c.bf16 %v2006_v13, %v2002_v24  ;;  %v2037_v56 = vpack.c.bf16 %v2005_v12, %v2001_v1  ;;  %v5347_v12 = vld [vmem:[#allocation5 + $0x8] sm:$0xff]  }
 0x2f3   :  { %v2039_v50 = vpack.c.bf16 %v2007_v18, %v2003_v3 }
 0x2f4   :  { %2182 = vmatprep.subr.bf16.mxu1 %v2037_v56 }
 0x2f5   :  { %2183 = vmatpush1.bf16.msra.mxu1 %v2036_v38 }
 0x2f6   :  { %2361 = vmatprep.subr.bf16.mxu1 %v2011_v17  ;;  %v2618_v17 = vld [vmem:[#allocation7] sm:$0xff] }
 0x2f7   :  { %v3964_v62 = vcombine.low %v2618_v17, %v2634_v15  ;;  %v3965_v25 = vcombine.high %v2618_v17, %v2634_v15 }
 0x2f8   :  { %2201 = vmatmul.mubr.bf16.vlgmr.msra.gmra.mrb[144].mxu1 %v5334_v4 }
 0x2f9   :  { %2362 = vmatpush1.bf16.msra.mxu1 %v2010_v31  ;;  %2210 = vmatprep.mubr.bf16.mxu1 %v6136_v44  ;;  %v4180_v31 = vld [vmem:[#allocation5 + $0x20] sm:$0xff]  }
 0x2fa   :  { %2363 = vmatprep.subr.bf16.mxu1 %v2015_v22  ;;  %3002 = vmatprep.subr.bf16.mxu0 %v3965_v25  ;;  %v2666_v22 = vld [vmem:[#allocation7 + $0x180] sm:$0xff] }
 0x2fb   :  { %3003 = vmatpush1.bf16.xpose.msra.mxu0 %v3964_v62 }
 0x2fd   :  { %2364 = vmatpush1.bf16.msra.mxu1 %v2014_v28  ;;  %v2650_v28 = vld [vmem:[#allocation7 + $0x100] sm:$0xff] }
 0x2fe   :  { %2365 = vmatprep.subr.bf16.mxu1 %v2019_v19  ;;  %v3996_v35 = vcombine.low %v2650_v28, %v2666_v22  ;;  %v3997_v27 = vcombine.high %v2650_v28, %v2666_v22  ;;  %v4185_v19 = vld [vmem:[#allocation5 + $0x48] sm:$0xff]  }
 0x300   :  { %2211 = vmatmul.mubr.bf16.gmra.mrb[148].mxu1 %v5347_v12  ;;  %3004 = vmatprep.subr.bf16.mxu0 %v3997_v27 }
 0x301   :  { %2366 = vmatpush1.bf16.msra.mxu1 %v2018_v26  ;;  %2220 = vmatprep.mubr.bf16.mxu1 %v6136_v44  ;;  %v4184_v26 = vld [vmem:[#allocation5 + $0x40] sm:$0xff]  }
 0x302   :  { %2367 = vmatprep.subr.bf16.mxu1 %v2023_v53  ;;  %v5400_v53 = vld [vmem:[#allocation5 + $0x78] sm:$0xff]  }
 0x303   :  { %3005 = vmatpush1.bf16.xpose.msra.mxu0 %v3996_v35 }
 0x304   :  { %3051 = vmatprep.subr.bf16.mxu0 %v3967_v2 }
 0x305   :  { %2368 = vmatpush1.bf16.msra.mxu1 %v2022_v59  ;;  %v5396_v59 = vld [vmem:[#allocation5 + $0x70] sm:$0xff]  }
 0x306   :  { %2369 = vmatprep.subr.bf16.mxu1 %v2027_v41 }
 0x308   :  { %2221 = vmatmul.mubr.bf16.gmra.mrb[152].mxu1 %v5363_v7 }
 0x309   :  { %2370 = vmatpush1.bf16.msra.mxu1 %v2026_v30  ;;  %2230 = vmatprep.mubr.bf16.mxu1 %v6136_v44 }
 0x30a   :  { %2371 = vmatprep.subr.bf16.mxu1 %v6137_v29 }
 0x30d   :  { %2372 = vmatpush1.bf16.msra.mxu1 %v6138_v37 }
 0x30e   :  { %2373 = vmatprep.subr.bf16.mxu1 %v2035_v55 }
 0x310   :  { %2231 = vmatmul.mubr.bf16.gmra.mrb[156].mxu1 %v4179_v20 }
 0x311   :  { %2374 = vmatpush1.bf16.msra.mxu1 %v2034_v45  ;;  %2240 = vmatprep.mubr.bf16.mxu1 %v6136_v44  ;;  %v2667_v45 = vld [vmem:[#allocation7 + $0x188] sm:$0xff] }
 0x312   :  { %2375 = vmatprep.subr.bf16.mxu1 %v2039_v50  ;;  %v3999_v55 = vcombine.high %v2651_v6, %v2667_v45  ;;  %v3998_v58 = vcombine.low %v2651_v6, %v2667_v45 }
 0x315   :  { %2376 = vmatpush1.bf16.msra.mxu1 %v2038_v5 }
 0x318   :  { %2241 = vmatmul.mubr.bf16.gmra.mrb[160].mxu1 %v4180_v31 }
 0x319   :  { %2250 = vmatprep.mubr.bf16.mxu1 %v6136_v44 }
 0x320   :  { %2251 = vmatmul.mubr.bf16.gmra.mrb[164].mxu1 %v4181_v39 }
 0x321   :  { %2260 = vmatprep.mubr.bf16.mxu1 %v6136_v44 }
 0x328   :  { %2261 = vmatmul.mubr.bf16.gmra.mrb[168].mxu1 %v4182_v52 }
 0x329   :  { %2270 = vmatprep.mubr.bf16.mxu1 %v6136_v44 }
 0x330   :  { %2271 = vmatmul.mubr.bf16.gmra.mrb[172].mxu1 %v4183_v42 }
 0x331   :  { %2280 = vmatprep.mubr.bf16.mxu1 %v6136_v44 }
 0x338   :  { %2281 = vmatmul.mubr.bf16.gmra.mrb[176].mxu1 %v4184_v26 }
 0x339   :  { %2290 = vmatprep.mubr.bf16.mxu1 %v6136_v44 }
 0x340   :  { %2291 = vmatmul.mubr.bf16.gmra.mrb[180].mxu1 %v4185_v19 }
 0x341   :  { %2300 = vmatprep.mubr.bf16.mxu1 %v6136_v44 }
 0x348   :  { %2301 = vmatmul.mubr.bf16.gmra.mrb[184].mxu1 %v4186_v49 }
 0x349   :  { %2310 = vmatprep.mubr.bf16.mxu1 %v6136_v44 }
 0x350   :  { %2311 = vmatmul.mubr.bf16.gmra.mrb[188].mxu1 %v4187_v34 }
 0x351   :  { %2320 = vmatprep.mubr.bf16.mxu1 %v6136_v44 }
 0x358   :  { %2321 = vmatmul.mubr.bf16.gmra.mrb[192].mxu1 %v4188_v21 }
 0x359   :  { %2330 = vmatprep.mubr.bf16.mxu1 %v6136_v44 }
 0x360   :  { %2331 = vmatmul.mubr.bf16.gmra.mrb[196].mxu1 %v5392_v32 }
 0x361   :  { %2340 = vmatprep.mubr.bf16.mxu1 %v6136_v44 }
 0x368   :  { %2341 = vmatmul.mubr.bf16.gmra.mrb[200].mxu1 %v5396_v59 }
 0x369   :  { %2350 = vmatprep.mubr.bf16.mxu1 %v6136_v44 }
 0x370   :  { %2351 = vmatmul.mubr.bf16.gmra.mrb[204].mxu1 %v5400_v53 }
 0x371   :  { %2393 = vmatprep.mubr.bf16.mxu1 %v6136_v44 }
 0x378   :  { %2394 = vmatmul.mubr.bf16.vlgmr.msra.gmra.mrb[208].mxu1 %v5334_v4 }
 0x379   :  { %2403 = vmatprep.mubr.bf16.mxu1 %v6136_v44 }
 0x380   :  { %2404 = vmatmul.mubr.bf16.gmra.mrb[212].mxu1 %v5347_v12 }
 0x381   :  { %2413 = vmatprep.mubr.bf16.mxu1 %v6136_v44 }
 0x388   :  { %2414 = vmatmul.mubr.bf16.gmra.mrb[216].mxu1 %v5363_v7 }
 0x389   :  { %2423 = vmatprep.mubr.bf16.mxu1 %v6136_v44 }
 0x390   :  { %2424 = vmatmul.mubr.bf16.gmra.mrb[220].mxu1 %v4179_v20 }
 0x391   :  { %2433 = vmatprep.mubr.bf16.mxu1 %v6136_v44 }
 0x398   :  { %2434 = vmatmul.mubr.bf16.gmra.mrb[224].mxu1 %v4180_v31 }
 0x399   :  { %2443 = vmatprep.mubr.bf16.mxu1 %v6136_v44 }
 0x3a0   :  { %2444 = vmatmul.mubr.bf16.gmra.mrb[228].mxu1 %v4181_v39 }
 0x3a1   :  { %2453 = vmatprep.mubr.bf16.mxu1 %v6136_v44 }
 0x3a8   :  { %2454 = vmatmul.mubr.bf16.gmra.mrb[232].mxu1 %v4182_v52 }
 0x3a9   :  { %2463 = vmatprep.mubr.bf16.mxu1 %v6136_v44 }
 0x3b0   :  { %2464 = vmatmul.mubr.bf16.gmra.mrb[236].mxu1 %v4183_v42 }
 0x3b1   :  { %2473 = vmatprep.mubr.bf16.mxu1 %v6136_v44 }
 0x3b8   :  { %2474 = vmatmul.mubr.bf16.gmra.mrb[240].mxu1 %v4184_v26 }
 0x3b9   :  { %2483 = vmatprep.mubr.bf16.mxu1 %v6136_v44 }
 0x3c0   :  { %2484 = vmatmul.mubr.bf16.gmra.mrb[244].mxu1 %v4185_v19 }
 0x3c1   :  { %2493 = vmatprep.mubr.bf16.mxu1 %v6136_v44 }
 0x3c8   :  { %2494 = vmatmul.mubr.bf16.gmra.mrb[248].mxu1 %v4186_v49 }
 0x3c9   :  { %2503 = vmatprep.mubr.bf16.mxu1 %v6136_v44 }
 0x3cb   :  { %v2202_v46 = vpop.f32.mrb[144].mxu1 }
 0x3cc   :  { %v2204_v30 = vpop.f32.mrb[145].mxu1 }
 0x3cd   :  { %v2206_v41 = vpop.f32.mrb[146].mxu1 }
 0x3ce   :  { %v2554_v51 = vpack.c.bf16 %v2206_v41, %v2202_v46  ;;  %v2208_v60 = vpop.f32.mrb[147].mxu1 }
 0x3cf   :  { %v2555_v10 = vpack.c.bf16 %v2208_v60, %v2204_v30 }
 0x3d0   :  { %2504 = vmatmul.mubr.bf16.gmra.mrb[252].mxu1 %v4187_v34 }
 0x3d1   :  { %3034 = vmatprep.mubr.bf16.mxu0 %v2555_v10  ;;  %2513 = vmatprep.mubr.bf16.mxu1 %v6136_v44 }
 0x3d2   :  { %3035 = vmatmul.mubr.bf16.vlgmr.msra.gmra.mrb[144].mxu0 %v2554_v51 }
 0x3d3   :  { %v5419_v47 = vpop.f32.mrb[148].mxu1  ;;  %3052 = vmatpush1.bf16.xpose.msra.mxu0 %v3966_v54 }
 0x3d4   :  { %v5421_v14 = vpop.f32.mrb[149].mxu1  ;;  %3053 = vmatprep.subr.bf16.mxu0 %v3999_v55 }
 0x3d5   :  { %v5423_v23 = vpop.f32.mrb[150].mxu1 }
 0x3d6   :  { %v5427_v1 = vpop.f32.mrb[151].mxu1 }
 0x3d8   :  { %2514 = vmatmul.mubr.bf16.gmra.mrb[0].mxu1 %v4188_v21 }
 0x3d9   :  { %2523 = vmatprep.mubr.bf16.mxu1 %v6136_v44 }
 0x3db   :  { %v5440_v3 = vpop.f32.mrb[152].mxu1  ;;  %3054 = vmatpush1.bf16.xpose.msra.mxu0 %v3998_v58 }
 0x3dc   :  { %v5442_v16 = vpop.f32.mrb[153].mxu1  ;;  %3100 = vmatprep.subr.bf16.mxu0 %v3969_v9 }
 0x3dd   :  { %v5444_v57 = vpop.f32.mrb[154].mxu1 }
 0x3de   :  { %v5448_v61 = vpop.f32.mrb[155].mxu1 }
 0x3e0   :  { %2524 = vmatmul.mubr.bf16.gmra.mrb[4].mxu1 %v5392_v32 }
 0x3e1   :  { %2533 = vmatprep.mubr.bf16.mxu1 %v6136_v44 }
 0x3e3   :  { %v5454_v13 = vpop.f32.mrb[156].mxu1 }
 0x3e4   :  { %v5456_v8 = vpop.f32.mrb[157].mxu1 }
 0x3e5   :  { %v5458_v38 = vpop.f32.mrb[158].mxu1 }
 0x3e6   :  { %v5462_v5 = vpop.f32.mrb[159].mxu1 }
 0x3e8   :  { %2534 = vmatmul.mubr.bf16.gmra.mrb[8].mxu1 %v5396_v59 }
 0x3e9   :  { %2543 = vmatprep.mubr.bf16.mxu1 %v6136_v44 }
 0x3eb   :  { %v5468_v50 = vpop.f32.mrb[160].mxu1 }
 0x3ec   :  { %v5470_v4 = vpop.f32.mrb[161].mxu1 }
 0x3ed   :  { %v5472_v12 = vpop.f32.mrb[162].mxu1 }
 0x3ee   :  { %v5476_v29 = vpop.f32.mrb[163].mxu1 }
 0x3f0   :  { %2544 = vmatmul.mubr.bf16.gmra.mrb[12].mxu1 %v5400_v53 }
 0x3f3   :  { %v5481_v37 = vpop.f32.mrb[164].mxu1 }
 0x3f4   :  { %v5483_v31 = vpop.f32.mrb[165].mxu1 }
 0x3f5   :  { %v5485_v44 = vpop.f32.mrb[166].mxu1 }
 0x3f6   :  { %v5489_v15 = vpop.f32.mrb[167].mxu1 }
 0x3fb   :  { %v5493_v25 = vpop.f32.mrb[168].mxu1 }
 0x3fc   :  { %v5495_v39 = vpop.f32.mrb[169].mxu1 }
 0x3fd   :  { %v5497_v28 = vpop.f32.mrb[170].mxu1 }
 0x3fe   :  { %v5501_v35 = vpop.f32.mrb[171].mxu1 }
 0x403   :  { %v5505_v52 = vpop.f32.mrb[172].mxu1 }
 0x404   :  { %v5507_v42 = vpop.f32.mrb[173].mxu1 }
 0x405   :  { %v5509_v26 = vpop.f32.mrb[174].mxu1 }
 0x406   :  { %v5513_v49 = vpop.f32.mrb[175].mxu1 }
 0x40b   :  { %v5517_v21 = vpop.f32.mrb[176].mxu1 }
 0x40c   :  { %v5519_v32 = vpop.f32.mrb[177].mxu1 }
 0x40d   :  { %v5521_v59 = vpop.f32.mrb[178].mxu1 }
 0x40e   :  { %v5525_v11 = vpop.f32.mrb[179].mxu1 }
 0x413   :  { %v5529_v2 = vpop.f32.mrb[180].mxu1 }
 0x414   :  { %v5531_v46 = vpop.f32.mrb[181].mxu1 }
 0x415   :  { %v5533_v30 = vpop.f32.mrb[182].mxu1 }
 0x416   :  { %v5537_v51 = vpop.f32.mrb[183].mxu1 }
 0x41b   :  { %v5541_v10 = vpop.f32.mrb[184].mxu1 }
 0x41c   :  { %v5543_v54 = vpop.f32.mrb[185].mxu1 }
 0x41d   :  { %v5545_v6 = vpop.f32.mrb[186].mxu1 }
 0x41e   :  { %v5549_v55 = vpop.f32.mrb[187].mxu1 }
 0x423   :  { %v5553_v9 = vpop.f32.mrb[188].mxu1 }
 0x424   :  { %v5555_v41 = vpop.f32.mrb[189].mxu1 }
 0x425   :  { %v5557_v53 = vpop.f32.mrb[190].mxu1 }
 0x426   :  { %v5561_v63 = vpop.f32.mrb[191].mxu1 }
 0x42b   :  { %v5565_v45 = vpop.f32.mrb[192].mxu1 }
 0x42c   :  { %6139 = vst [vmem:[#allocation24_spill] sm:$0xff] %v5565_v45  ;;  %v5567_v34 = vpop.f32.mrb[193].mxu1 }
 0x42d   :  { %6140 = vst [vmem:[#allocation26_spill] sm:$0xff] %v5567_v34  ;;  %v5569_v22 = vpop.f32.mrb[194].mxu1 }
 0x42e   :  { %6141 = vst [vmem:[#allocation25_spill] sm:$0xff] %v5569_v22  ;;  %v5573_v27 = vpop.f32.mrb[195].mxu1 }
 0x433   :  { %v5577_v60 = vpop.f32.mrb[196].mxu1 }
 0x434   :  { %6142 = vst [vmem:[#allocation28_spill] sm:$0xff] %v5577_v60  ;;  %v5579_v62 = vpop.f32.mrb[197].mxu1 }
 0x435   :  { %6143 = vst [vmem:[#allocation27_spill] sm:$0xff] %v5579_v62  ;;  %v5581_v7 = vpop.f32.mrb[198].mxu1 }
 0x436   :  { %6144 = vst [vmem:[#allocation30_spill] sm:$0xff] %v5581_v7  ;;  %v5585_v20 = vpop.f32.mrb[199].mxu1 }
 0x437   :  { %6145 = vst [vmem:[#allocation29_spill] sm:$0xff] %v5585_v20 }
 0x43b   :  { %v5589_v58 = vpop.f32.mrb[200].mxu1 }
 0x43c   :  { %6146 = vst [vmem:[#allocation31_spill] sm:$0xff] %v5589_v58  ;;  %v5591_v56 = vpop.f32.mrb[201].mxu1 }
 0x43d   :  { %6147 = vst [vmem:[#allocation32_spill] sm:$0xff] %v5591_v56  ;;  %v5593_v0 = vpop.f32.mrb[202].mxu1  ;;  %v6153_v56 = vpack.c.bf16 %v5427_v1, %v5421_v14 }
 0x43e   :  { %6148 = vst [vmem:[#allocation34_spill] sm:$0xff] %v5593_v0  ;;  %v5597_v33 = vpop.f32.mrb[203].mxu1 }
 0x43f   :  { %6149 = vst [vmem:[#allocation33_spill] sm:$0xff] %v5597_v33 }
 0x443   :  { %v5601_v19 = vpop.f32.mrb[204].mxu1 }
 0x444   :  { %6150 = vst [vmem:[#allocation36_spill] sm:$0xff] %v5601_v19  ;;  %v5603_v24 = vpop.f32.mrb[205].mxu1  ;;  %v2652_v19 = vld [vmem:[#allocation7 + $0x110] sm:$0xff] }
 0x445   :  { %6151 = vst [vmem:[#allocation35_spill] sm:$0xff] %v5603_v24  ;;  %v5605_v43 = vpop.f32.mrb[206].mxu1 }
 0x446   :  { %6152 = vst [vmem:[#allocation38_spill] sm:$0xff] %v5605_v43  ;;  %v5609_v60 = vpop.f32.mrb[207].mxu1  ;;  %v2668_v43 = vld [vmem:[#allocation7 + $0x190] sm:$0xff] }
 0x447   :  { %v4001_v24 = vcombine.high %v2652_v19, %v2668_v43 }
 0x44b   :  { %v2395_v17 = vpop.f32.mrb[208].mxu1 }
 0x44c   :  { %v2397_v58 = vpop.f32.mrb[209].mxu1 }
 0x44d   :  { %v2399_v0 = vpop.f32.mrb[210].mxu1 }
 0x44e   :  { %v2556_v62 = vpack.c.bf16 %v2399_v0, %v2395_v17  ;;  %v2401_v20 = vpop.f32.mrb[211].mxu1  ;;  %v6154_v0 = vpack.c.bf16 %v5423_v23, %v5419_v47  ;;  %v6156_v47 = vpack.c.bf16 %v5448_v61, %v5442_v16  ;;  %v2622_v61 = vld [vmem:[#allocation7 + $0x20] sm:$0xff] }
 0x44f   :  { %v2557_v36 = vpack.c.bf16 %v2401_v20, %v2397_v58  ;;  %v2637_v20 = vld [vmem:[#allocation7 + $0x98] sm:$0xff] }
 0x451   :  { %3042 = vmatprep.mubr.bf16.mxu0 %v2557_v36  ;;  %v6155_v36 = vcombine.low %v5431_v40, %v5433_v48  ;;  %v2653_v48 = vld [vmem:[#allocation7 + $0x118] sm:$0xff] }
 0x452   :  { %3043 = vmatmul.mubr.bf16.gmra.mrb[148].mxu0 %v2556_v62 }
 0x453   :  { %3083 = vmatprep.mubr.bf16.mxu0 %v6153_v56  ;;  %v2405_v33 = vpop.f32.mrb[212].mxu1  ;;  %v2621_v56 = vld [vmem:[#allocation7 + $0x18] sm:$0xff] }
 0x454   :  { %v2407_v45 = vpop.f32.mrb[213].mxu1 }
 0x455   :  { %v2409_v18 = vpop.f32.mrb[214].mxu1 }
 0x456   :  { %v2560_v22 = vpack.c.bf16 %v2409_v18, %v2405_v33  ;;  %v2411_v34 = vpop.f32.mrb[215].mxu1  ;;  %v4000_v18 = vcombine.low %v2652_v19, %v2668_v43  ;;  %v6157_v43 = vpack.c.bf16 %v5444_v57, %v5440_v3  ;;  %v2638_v19 = vld [vmem:[#allocation7 + $0xa0] sm:$0xff]  ;;  %v6158_v3 = vpack.c.bf16 %v5462_v5, %v5456_v8 }
 0x457   :  { %v2561_v7 = vpack.c.bf16 %v2411_v34, %v2407_v45  ;;  %v3971_v45 = vcombine.high %v2621_v56, %v2637_v20  ;;  %v6159_v8 = vpack.c.bf16 %v5458_v38, %v5454_v13 }
 0x45a   :  { %3084 = vmatmul.mubr.bf16.vlgmr.msra.gmra.mrb[144].mxu0 %v6154_v0 }
 0x45b   :  { %3101 = vmatpush1.bf16.xpose.msra.mxu0 %v6155_v36  ;;  %3091 = vmatprep.mubr.bf16.mxu0 %v2561_v7  ;;  %v2415_v14 = vpop.f32.mrb[216].mxu1  ;;  %v3970_v36 = vcombine.low %v2621_v56, %v2637_v20  ;;  %v3973_v20 = vcombine.high %v2622_v61, %v2638_v19 }
 0x45c   :  { %3102 = vmatprep.subr.bf16.mxu0 %v4001_v24  ;;  %v2417_v1 = vpop.f32.mrb[217].mxu1  ;;  %v2669_v24 = vld [vmem:[#allocation7 + $0x198] sm:$0xff] }
 0x45d   :  { %v2419_v17 = vpop.f32.mrb[218].mxu1 }
 0x45e   :  { %v2564_v62 = vpack.c.bf16 %v2419_v17, %v2415_v14  ;;  %v2421_v33 = vpop.f32.mrb[219].mxu1  ;;  %v4003_v17 = vcombine.high %v2653_v48, %v2669_v24 }
 0x45f   :  { %v2565_v34 = vpack.c.bf16 %v2421_v33, %v2417_v1 }
 0x462   :  { %3092 = vmatmul.mubr.bf16.gmra.mrb[148].mxu0 %v2560_v22 }
 0x463   :  { %3103 = vmatpush1.bf16.xpose.msra.mxu0 %v4000_v18  ;;  %3132 = vmatprep.mubr.bf16.mxu0 %v6156_v47  ;;  %v2425_v23 = vpop.f32.mrb[220].mxu1  ;;  %v2654_v47 = vld [vmem:[#allocation7 + $0x120] sm:$0xff] }
 0x464   :  { %3149 = vmatprep.subr.bf16.mxu0 %v3971_v45  ;;  %v2427_v40 = vpop.f32.mrb[221].mxu1  ;;  %v4002_v45 = vcombine.low %v2653_v48, %v2669_v24 }
 0x465   :  { %v2429_v7 = vpop.f32.mrb[222].mxu1 }
 0x466   :  { %v2568_v58 = vpack.c.bf16 %v2429_v7, %v2425_v23  ;;  %v2431_v0 = vpop.f32.mrb[223].mxu1  ;;  %v2670_v23 = vld [vmem:[#allocation7 + $0x1a0] sm:$0xff]  ;;  %v3972_v7 = vcombine.low %v2622_v61, %v2638_v19 }
 0x467   :  { %v2569_v14 = vpack.c.bf16 %v2431_v0, %v2427_v40  ;;  %v4005_v0 = vcombine.high %v2654_v47, %v2670_v23  ;;  %v4004_v19 = vcombine.low %v2654_v47, %v2670_v23 }
 0x46a   :  { %3133 = vmatmul.mubr.bf16.vlgmr.msra.gmra.mrb[144].mxu0 %v6157_v43  ;;  %v2639_v43 = vld [vmem:[#allocation7 + $0xa8] sm:$0xff] }
 0x46b   :  { %3150 = vmatpush1.bf16.xpose.msra.mxu0 %v3970_v36  ;;  %3140 = vmatprep.mubr.bf16.mxu0 %v2565_v34  ;;  %v5628_v22 = vpop.f32.mrb[224].mxu1 }
 0x46c   :  { %3151 = vmatprep.subr.bf16.mxu0 %v4003_v17  ;;  %v2437_v16 = vpop.f32.mrb[225].mxu1  ;;  %v2623_v17 = vld [vmem:[#allocation7 + $0x28] sm:$0xff] }
 0x46d   :  { %v2439_v1 = vpop.f32.mrb[226].mxu1  ;;  %v3975_v38 = vcombine.high %v2623_v17, %v2639_v43 }
 0x46e   :  { %v2572_v33 = vpack.c.bf16 %v2439_v1, %v5628_v22  ;;  %v2441_v18 = vpop.f32.mrb[227].mxu1 }
 0x46f   :  { %v2573_v56 = vpack.c.bf16 %v2441_v18, %v2437_v16 }
 0x472   :  { %3141 = vmatmul.mubr.bf16.gmra.mrb[148].mxu0 %v2564_v62 }
 0x473   :  { %3152 = vmatpush1.bf16.xpose.msra.mxu0 %v4002_v45  ;;  %3181 = vmatprep.mubr.bf16.mxu0 %v6158_v3  ;;  %v5634_v57 = vpop.f32.mrb[228].mxu1  ;;  %v2655_v45 = vld [vmem:[#allocation7 + $0x128] sm:$0xff] }
 0x474   :  { %3198 = vmatprep.subr.bf16.mxu0 %v3973_v20  ;;  %v5636_v34 = vpop.f32.mrb[229].mxu1  ;;  %v2671_v20 = vld [vmem:[#allocation7 + $0x1a8] sm:$0xff] }
 0x475   :  { %v5638_v40 = vpop.f32.mrb[230].mxu1 }
 0x476   :  { %v2576_v48 = vpack.c.bf16 %v5638_v40, %v5634_v57  ;;  %v2451_v24 = vpop.f32.mrb[231].mxu1 }
 0x477   :  { %v2577_v62 = vpack.c.bf16 %v2451_v24, %v5636_v34 }
 0x47a   :  { %3182 = vmatmul.mubr.bf16.vlgmr.msra.gmra.mrb[144].mxu0 %v6159_v8  ;;  %v2640_v8 = vld [vmem:[#allocation7 + $0xb0] sm:$0xff] }
 0x47b   :  { %3199 = vmatpush1.bf16.xpose.msra.mxu0 %v3972_v7  ;;  %3189 = vmatprep.mubr.bf16.mxu0 %v2569_v14  ;;  %v5646_v5 = vpop.f32.mrb[232].mxu1  ;;  %v6160_v14 = vpack.c.bf16 %v5476_v29, %v5470_v4  ;;  %v4007_v4 = vcombine.high %v2655_v45, %v2671_v20  ;;  %v6161_v29 = vpack.c.bf16 %v5472_v12, %v5468_v50  ;;  %v2625_v50 = vld [vmem:[#allocation7 + $0x38] sm:$0xff] }
 0x47c   :  { %3200 = vmatprep.subr.bf16.mxu0 %v4005_v0  ;;  %v5648_v36 = vpop.f32.mrb[233].mxu1  ;;  %v2624_v0 = vld [vmem:[#allocation7 + $0x30] sm:$0xff] }
 0x47d   :  { %v5650_v22 = vpop.f32.mrb[234].mxu1  ;;  %v3977_v12 = vcombine.high %v2624_v0, %v2640_v8 }
 0x47e   :  { %v2580_v16 = vpack.c.bf16 %v5650_v22, %v5646_v5  ;;  %v5654_v61 = vpop.f32.mrb[235].mxu1 }
 0x47f   :  { %v2581_v13 = vpack.c.bf16 %v5654_v61, %v5648_v36  ;;  %v6166_v61 = vpack.c.bf16 %v5513_v49, %v5507_v42  ;;  %v6167_v49 = vpack.c.bf16 %v5509_v26, %v5505_v52 }
 0x482   :  { %3190 = vmatmul.mubr.bf16.gmra.mrb[148].mxu0 %v2568_v58  ;;  %v3974_v58 = vcombine.low %v2623_v17, %v2639_v43 }
 0x483   :  { %3201 = vmatpush1.bf16.xpose.msra.mxu0 %v4004_v19  ;;  %3230 = vmatprep.mubr.bf16.mxu0 %v6160_v14  ;;  %v5661_v1 = vpop.f32.mrb[236].mxu1 }
 0x484   :  { %3247 = vmatprep.subr.bf16.mxu0 %v3975_v38  ;;  %v5663_v18 = vpop.f32.mrb[237].mxu1  ;;  %v4006_v38 = vcombine.low %v2655_v45, %v2671_v20  ;;  %v2641_v45 = vld [vmem:[#allocation7 + $0xb8] sm:$0xff] }
 0x485   :  { %v5665_v3 = vpop.f32.mrb[238].mxu1  ;;  %v3978_v57 = vcombine.low %v2625_v50, %v2641_v45 }
 0x486   :  { %v5669_v47 = vpop.f32.mrb[239].mxu1 }
 0x487   :  { %v2585_v23 = vpack.c.bf16 %v5669_v47, %v5663_v18  ;;  %v6168_v47 = vpack.c.bf16 %v5665_v3, %v5661_v1 }
 0x48a   :  { %3231 = vmatmul.mubr.bf16.vlgmr.msra.gmra.mrb[144].mxu0 %v6161_v29  ;;  %v2672_v29 = vld [vmem:[#allocation7 + $0x1b0] sm:$0xff] }
 0x48b   :  { %3248 = vmatpush1.bf16.xpose.msra.mxu0 %v3974_v58  ;;  %3238 = vmatprep.mubr.bf16.mxu0 %v2573_v56  ;;  %v5676_v24 = vpop.f32.mrb[240].mxu1  ;;  %v6162_v56 = vpack.c.bf16 %v5489_v15, %v5483_v31  ;;  %v6163_v15 = vpack.c.bf16 %v5485_v44, %v5481_v37  ;;  %v3979_v44 = vcombine.high %v2625_v50, %v2641_v45  ;;  %v2642_v50 = vld [vmem:[#allocation7 + $0xc0] sm:$0xff] }
 0x48c   :  { %3249 = vmatprep.subr.bf16.mxu0 %v4007_v4  ;;  %v5678_v7 = vpop.f32.mrb[241].mxu1  ;;  %v2656_v4 = vld [vmem:[#allocation7 + $0x130] sm:$0xff] }
 0x48d   :  { %v5680_v19 = vpop.f32.mrb[242].mxu1  ;;  %v4009_v31 = vcombine.high %v2656_v4, %v2672_v29 }
 0x48e   :  { %v5684_v43 = vpop.f32.mrb[243].mxu1 }
 0x492   :  { %3239 = vmatmul.mubr.bf16.gmra.mrb[148].mxu0 %v2572_v33  ;;  %v3976_v33 = vcombine.low %v2624_v0, %v2640_v8 }
 0x493   :  { %3250 = vmatpush1.bf16.xpose.msra.mxu0 %v4006_v38  ;;  %3279 = vmatprep.mubr.bf16.mxu0 %v6162_v56  ;;  %v5691_v14 = vpop.f32.mrb[244].mxu1  ;;  %v4008_v38 = vcombine.low %v2656_v4, %v2672_v29  ;;  %v2673_v4 = vld [vmem:[#allocation7 + $0x1b8] sm:$0xff] }
 0x494   :  { %3296 = vmatprep.subr.bf16.mxu0 %v3977_v12  ;;  %v5693_v58 = vpop.f32.mrb[245].mxu1 }
 0x495   :  { %v5695_v17 = vpop.f32.mrb[246].mxu1 }
 0x496   :  { %v5699_v20 = vpop.f32.mrb[247].mxu1 }
 0x49a   :  { %3280 = vmatmul.mubr.bf16.vlgmr.msra.gmra.mrb[144].mxu0 %v6163_v15  ;;  %v2657_v15 = vld [vmem:[#allocation7 + $0x138] sm:$0xff] }
 0x49b   :  { %3297 = vmatpush1.bf16.xpose.msra.mxu0 %v3976_v33  ;;  %3287 = vmatprep.mubr.bf16.mxu0 %v2577_v62  ;;  %v5706_v12 = vpop.f32.mrb[248].mxu1  ;;  %v6164_v62 = vpack.c.bf16 %v5501_v35, %v5495_v39  ;;  %v4011_v39 = vcombine.high %v2657_v15, %v2673_v4  ;;  %v6165_v35 = vpack.c.bf16 %v5497_v28, %v5493_v25 }
 0x49c   :  { %3298 = vmatprep.subr.bf16.mxu0 %v4009_v31  ;;  %v5708_v56 = vpop.f32.mrb[249].mxu1  ;;  %v4010_v25 = vcombine.low %v2657_v15, %v2673_v4  ;;  %v2674_v15 = vld [vmem:[#allocation7 + $0x1c0] sm:$0xff] }
 0x49d   :  { %v5710_v34 = vpop.f32.mrb[250].mxu1 }
 0x49e   :  { %v5714_v8 = vpop.f32.mrb[251].mxu1 }
 0x4a2   :  { %3288 = vmatmul.mubr.bf16.gmra.mrb[148].mxu0 %v2576_v48 }
 0x4a3   :  { %3299 = vmatpush1.bf16.xpose.msra.mxu0 %v4008_v38  ;;  %3328 = vmatprep.mubr.bf16.mxu0 %v6164_v62  ;;  %v5724_v33 = vpop.f32.mrb[252].mxu1 }
 0x4a4   :  { %3345 = vmatprep.subr.bf16.mxu0 %v3979_v44  ;;  %v5726_v31 = vpop.f32.mrb[253].mxu1  ;;  %v2626_v44 = vld [vmem:[#allocation7 + $0x40] sm:$0xff] }
 0x4a5   :  { %v5728_v29 = vpop.f32.mrb[254].mxu1  ;;  %v3981_v36 = vcombine.high %v2626_v44, %v2642_v50  ;;  %v3980_v5 = vcombine.low %v2626_v44, %v2642_v50  ;;  %v2643_v44 = vld [vmem:[#allocation7 + $0xc8] sm:$0xff] }
 0x4a6   :  { %v5732_v37 = vpop.f32.mrb[255].mxu1 }
 0x4a7   :  { %v2601_v40 = vpack.c.bf16 %v5732_v37, %v5726_v31  ;;  %v6186_v31 = vld [vmem:[#allocation25_spill] sm:$0xff] }
 0x4aa   :  { %3329 = vmatmul.mubr.bf16.vlgmr.msra.gmra.mrb[144].mxu0 %v6165_v35 }
 0x4ab   :  { %3346 = vmatpush1.bf16.xpose.msra.mxu0 %v3978_v57  ;;  %3336 = vmatprep.mubr.bf16.mxu0 %v2581_v13  ;;  %v5742_v48 = vpop.f32.mrb[0].mxu1 }
 0x4ac   :  { %3347 = vmatprep.subr.bf16.mxu0 %v4011_v39  ;;  %v5744_v38 = vpop.f32.mrb[1].mxu1  ;;  %v2658_v39 = vld [vmem:[#allocation7 + $0x140] sm:$0xff] }
 0x4ad   :  { %v5746_v45 = vpop.f32.mrb[2].mxu1  ;;  %v4013_v42 = vcombine.high %v2658_v39, %v2674_v15  ;;  %v4012_v52 = vcombine.low %v2658_v39, %v2674_v15  ;;  %v2675_v39 = vld [vmem:[#allocation7 + $0x1c8] sm:$0xff] }
 0x4ae   :  { %v5750_v0 = vpop.f32.mrb[3].mxu1 }
 0x4af   :  { %v2605_v28 = vpack.c.bf16 %v5750_v0, %v5744_v38  ;;  %v6193_v38 = vld [vmem:[#allocation30_spill] sm:$0xff] }
 0x4b2   :  { %3337 = vmatmul.mubr.bf16.gmra.mrb[148].mxu0 %v2580_v16 }
 0x4b3   :  { %3348 = vmatpush1.bf16.xpose.msra.mxu0 %v4010_v25  ;;  %3377 = vmatprep.mubr.bf16.mxu0 %v6166_v61  ;;  %v5760_v13 = vpop.f32.mrb[4].mxu1 }
 0x4b4   :  { %3394 = vmatprep.subr.bf16.mxu0 %v3981_v36  ;;  %v5762_v57 = vpop.f32.mrb[5].mxu1  ;;  %v2627_v36 = vld [vmem:[#allocation7 + $0x48] sm:$0xff] }
 0x4b5   :  { %v5764_v4 = vpop.f32.mrb[6].mxu1  ;;  %v3983_v18 = vcombine.high %v2627_v36, %v2643_v44  ;;  %v3982_v1 = vcombine.low %v2627_v36, %v2643_v44  ;;  %v6172_v36 = vpack.c.bf16 %v5680_v19, %v5676_v24  ;;  %v6173_v44 = vpack.c.bf16 %v5537_v51, %v5531_v46  ;;  %v2629_v24 = vld [vmem:[#allocation7 + $0x58] sm:$0xff] }
 0x4b6   :  { %v5768_v62 = vpop.f32.mrb[7].mxu1  ;;  %v2645_v19 = vld [vmem:[#allocation7 + $0xd8] sm:$0xff]  ;;  %v6176_v51 = vpack.c.bf16 %v5695_v17, %v5691_v14  ;;  %v2630_v17 = vld [vmem:[#allocation7 + $0x60] sm:$0xff] }
 0x4b7   :  { %v2609_v22 = vpack.c.bf16 %v5768_v62, %v5762_v57  ;;  %v3987_v46 = vcombine.high %v2629_v24, %v2645_v19  ;;  %v2646_v14 = vld [vmem:[#allocation7 + $0xe0] sm:$0xff]  ;;  %v6200_v57 = vld [vmem:[#allocation34_spill] sm:$0xff] }
 0x4ba   :  { %3378 = vmatmul.mubr.bf16.vlgmr.msra.gmra.mrb[144].mxu0 %v6167_v49  ;;  %v2659_v49 = vld [vmem:[#allocation7 + $0x148] sm:$0xff] }
 0x4bb   :  { %3395 = vmatpush1.bf16.xpose.msra.mxu0 %v3980_v5  ;;  %3385 = vmatprep.mubr.bf16.mxu0 %v2585_v23  ;;  %v5778_v16 = vpop.f32.mrb[8].mxu1  ;;  %v6169_v23 = vpack.c.bf16 %v5525_v11, %v5519_v32  ;;  %v4015_v32 = vcombine.high %v2659_v49, %v2675_v39  ;;  %v6170_v11 = vpack.c.bf16 %v5521_v59, %v5517_v21  ;;  %v2660_v21 = vld [vmem:[#allocation7 + $0x150] sm:$0xff] }
 0x4bc   :  { %3396 = vmatprep.subr.bf16.mxu0 %v4013_v42  ;;  %v5780_v25 = vpop.f32.mrb[9].mxu1  ;;  %v2676_v59 = vld [vmem:[#allocation7 + $0x1d0] sm:$0xff] }
 0x4bd   :  { %v5782_v50 = vpop.f32.mrb[10].mxu1 }
 0x4be   :  { %v5786_v35 = vpop.f32.mrb[11].mxu1 }
 0x4c2   :  { %3386 = vmatmul.mubr.bf16.gmra.mrb[148].mxu0 %v6168_v47  ;;  %v2644_v47 = vld [vmem:[#allocation7 + $0xd0] sm:$0xff] }
 0x4c3   :  { %3397 = vmatpush1.bf16.xpose.msra.mxu0 %v4012_v52  ;;  %3426 = vmatprep.mubr.bf16.mxu0 %v6169_v23  ;;  %v5796_v5 = vpop.f32.mrb[12].mxu1  ;;  %v6171_v52 = vpack.c.bf16 %v5684_v43, %v5678_v7  ;;  %v4014_v23 = vcombine.low %v2659_v49, %v2675_v39  ;;  %v4017_v7 = vcombine.high %v2660_v21, %v2676_v59 }
 0x4c4   :  { %3443 = vmatprep.subr.bf16.mxu0 %v3983_v18  ;;  %v5798_v42 = vpop.f32.mrb[13].mxu1  ;;  %v2628_v18 = vld [vmem:[#allocation7 + $0x50] sm:$0xff]  ;;  %v6174_v43 = vpack.c.bf16 %v5533_v30, %v5529_v2  ;;  %v6175_v49 = vpack.c.bf16 %v5699_v20, %v5693_v58  ;;  %v4016_v39 = vcombine.low %v2660_v21, %v2676_v59  ;;  %v2661_v2 = vld [vmem:[#allocation7 + $0x158] sm:$0xff]  ;;  %v6178_v20 = vpack.c.bf16 %v5545_v6, %v5541_v10  ;;  %v2662_v10 = vld [vmem:[#allocation7 + $0x160] sm:$0xff] }
 0x4c5   :  { %v5800_v15 = vpop.f32.mrb[14].mxu1  ;;  %v3985_v61 = vcombine.high %v2628_v18, %v2644_v47  ;;  %v2677_v30 = vld [vmem:[#allocation7 + $0x1d8] sm:$0xff]  ;;  %v2678_v6 = vld [vmem:[#allocation7 + $0x1e0] sm:$0xff] }
 0x4c6   :  { %v5804_v26 = vpop.f32.mrb[15].mxu1  ;;  %v4019_v58 = vcombine.high %v2661_v2, %v2677_v30 }
 0x4c7   :  { %v2617_v3 = vpack.c.bf16 %v5804_v26, %v5798_v42 }
 0x4ca   :  { %3427 = vmatmul.mubr.bf16.vlgmr.msra.gmra.mrb[144].mxu0 %v6170_v11  ;;  %v6179_v11 = vpack.c.bf16 %v5714_v8, %v5708_v56  ;;  %v4021_v56 = vcombine.high %v2662_v10, %v2678_v6  ;;  %v6182_v8 = vpack.c.bf16 %v5557_v53, %v5553_v9  ;;  %v2663_v53 = vld [vmem:[#allocation7 + $0x168] sm:$0xff] }
 0x4cb   :  { %3444 = vmatpush1.bf16.xpose.msra.mxu0 %v3982_v1  ;;  %3434 = vmatprep.mubr.bf16.mxu0 %v6171_v52  ;;  %v3984_v1 = vcombine.low %v2628_v18, %v2644_v47  ;;  %v4018_v52 = vcombine.low %v2661_v2, %v2677_v30  ;;  %v6181_v18 = vpack.c.bf16 %v5561_v63, %v5555_v41  ;;  %v2679_v9 = vld [vmem:[#allocation7 + $0x1e8] sm:$0xff] }
 0x4cc   :  { %3445 = vmatprep.subr.bf16.mxu0 %v4015_v32  ;;  %v3986_v32 = vcombine.low %v2629_v24, %v2645_v19  ;;  %v3988_v47 = vcombine.low %v2630_v17, %v2646_v14  ;;  %v6183_v41 = vpack.c.bf16 %v5728_v29, %v5724_v33  ;;  %v4023_v37 = vcombine.high %v2663_v53, %v2679_v9  ;;  %v2632_v33 = vld [vmem:[#allocation7 + $0x70] sm:$0xff] }
 0x4cd   :  { %v2648_v29 = vld [vmem:[#allocation7 + $0xf0] sm:$0xff]  ;;  %v6196_v30 = vpack.c.bf16 %v5764_v4, %v5760_v13  ;;  %v6204_v4 = vpack.c.bf16 %v5782_v50, %v5778_v16 }
 0x4ce   :  { %v2664_v19 = vld [vmem:[#allocation7 + $0x170] sm:$0xff] }
 0x4d2   :  { %3435 = vmatmul.mubr.bf16.gmra.mrb[148].mxu0 %v6172_v36  ;;  %v6184_v36 = vld [vmem:[#allocation26_spill] sm:$0xff] }
 0x4d3   :  { %3446 = vmatpush1.bf16.xpose.msra.mxu0 %v4014_v23  ;;  %3475 = vmatprep.mubr.bf16.mxu0 %v6173_v44  ;;  %v4020_v23 = vcombine.low %v2662_v10, %v2678_v6  ;;  %v6185_v44 = vpack.c.bf16 %v5573_v27, %v6184_v36  ;;  %v3993_v27 = vcombine.high %v2632_v33, %v2648_v29  ;;  %v6207_v10 = vld [vmem:[#allocation38_spill] sm:$0xff]  ;;  %v6208_v6 = vld [vmem:[#allocation36_spill] sm:$0xff] }
 0x4d4   :  { %3492 = vmatprep.subr.bf16.mxu0 %v3985_v61  ;;  %v6177_v61 = vpack.c.bf16 %v5549_v55, %v5543_v54  ;;  %v3989_v54 = vcombine.high %v2630_v17, %v2646_v14  ;;  %v6180_v55 = vpack.c.bf16 %v5710_v34, %v5706_v12  ;;  %v2631_v34 = vld [vmem:[#allocation7 + $0x68] sm:$0xff]  ;;  %v2681_v17 = vld [vmem:[#allocation7 + $0x1f8] sm:$0xff] }
 0x4d5   :  { %v2647_v12 = vld [vmem:[#allocation7 + $0xe8] sm:$0xff] }
 0x4d6   :  { %v3991_v63 = vcombine.high %v2631_v34, %v2647_v12  ;;  %v3990_v21 = vcombine.low %v2631_v34, %v2647_v12 }
 0x4da   :  { %3476 = vmatmul.mubr.bf16.vlgmr.msra.gmra.mrb[144].mxu0 %v6174_v43  ;;  %v6190_v43 = vld [vmem:[#allocation29_spill] sm:$0xff] }
 0x4db   :  { %3493 = vmatpush1.bf16.xpose.msra.mxu0 %v3984_v1  ;;  %3483 = vmatprep.mubr.bf16.mxu0 %v6175_v49  ;;  %v4022_v1 = vcombine.low %v2663_v53, %v2679_v9  ;;  %v6191_v49 = vld [vmem:[#allocation27_spill] sm:$0xff] }
 0x4dc   :  { %3494 = vmatprep.subr.bf16.mxu0 %v4017_v7  ;;  %v6189_v7 = vpack.c.bf16 %v5746_v45, %v5742_v48  ;;  %v6192_v24 = vpack.c.bf16 %v6190_v43, %v6191_v49  ;;  %v2633_v48 = vld [vmem:[#allocation7 + $0x78] sm:$0xff] }
 0x4dd   :  { %v2649_v45 = vld [vmem:[#allocation7 + $0xf8] sm:$0xff] }
 0x4de   :  { %v3995_v2 = vcombine.high %v2633_v48, %v2649_v45  ;;  %v3994_v14 = vcombine.low %v2633_v48, %v2649_v45 }
 0x4e2   :  { %3484 = vmatmul.mubr.bf16.gmra.mrb[148].mxu0 %v6176_v51 }
 0x4e3   :  { %3495 = vmatpush1.bf16.xpose.msra.mxu0 %v4016_v39  ;;  %3524 = vmatprep.mubr.bf16.mxu0 %v6177_v61  ;;  %v2680_v39 = vld [vmem:[#allocation7 + $0x1f0] sm:$0xff] }
 0x4e4   :  { %3541 = vmatprep.subr.bf16.mxu0 %v3987_v46  ;;  %v3992_v46 = vcombine.low %v2632_v33, %v2648_v29  ;;  %v4025_v0 = vcombine.high %v2664_v19, %v2680_v39  ;;  %v4024_v61 = vcombine.low %v2664_v19, %v2680_v39 }
 0x4ea   :  { %3525 = vmatmul.mubr.bf16.vlgmr.msra.gmra.mrb[144].mxu0 %v6178_v20 }
 0x4eb   :  { %3542 = vmatpush1.bf16.xpose.msra.mxu0 %v3986_v32  ;;  %3532 = vmatprep.mubr.bf16.mxu0 %v6179_v11  ;;  %v6197_v32 = vld [vmem:[#allocation33_spill] sm:$0xff]  ;;  %v2665_v11 = vld [vmem:[#allocation7 + $0x178] sm:$0xff] }
 0x4ec   :  { %3543 = vmatprep.subr.bf16.mxu0 %v4019_v58  ;;  %v6198_v58 = vld [vmem:[#allocation32_spill] sm:$0xff]  ;;  %v4027_v62 = vcombine.high %v2665_v11, %v2681_v17  ;;  %v4026_v13 = vcombine.low %v2665_v11, %v2681_v17 }
 0x4ed   :  { %v6199_v20 = vpack.c.bf16 %v6197_v32, %v6198_v58 }
 0x4f2   :  { %3533 = vmatmul.mubr.bf16.gmra.mrb[148].mxu0 %v6180_v55  ;;  %v6205_v55 = vld [vmem:[#allocation35_spill] sm:$0xff] }
 0x4f3   :  { %3544 = vmatpush1.bf16.xpose.msra.mxu0 %v4018_v52  ;;  %3573 = vmatprep.mubr.bf16.mxu0 %v6181_v18  ;;  %v6206_v18 = vpack.c.bf16 %v5609_v60, %v6205_v55 }
 0x4f4   :  { %3590 = vmatprep.subr.bf16.mxu0 %v3989_v54  ;;  %v6203_v54 = vpack.c.bf16 %v5786_v35, %v5780_v25  ;;  %v6210_v35 = vpack.c.bf16 %v5800_v15, %v5796_v5 }
 0x4fa   :  { %3574 = vmatmul.mubr.bf16.vlgmr.msra.gmra.mrb[144].mxu0 %v6182_v8 }
 0x4fb   :  { %3591 = vmatpush1.bf16.xpose.msra.mxu0 %v3988_v47  ;;  %3581 = vmatprep.mubr.bf16.mxu0 %v2601_v40  ;;  %v6187_v40 = vld [vmem:[#allocation24_spill] sm:$0xff]  ;;  %v6209_v47 = vpack.c.bf16 %v6207_v10, %v6208_v6 }
 0x4fc   :  { %3592 = vmatprep.subr.bf16.mxu0 %v4021_v56  ;;  %v6188_v59 = vpack.c.bf16 %v6186_v31, %v6187_v40 }
 0x502   :  { %3582 = vmatmul.mubr.bf16.gmra.mrb[148].mxu0 %v6183_v41 }
 0x503   :  { %3593 = vmatpush1.bf16.xpose.msra.mxu0 %v4020_v23  ;;  %3622 = vmatprep.mubr.bf16.mxu0 %v6185_v44 }
 0x504   :  { %3639 = vmatprep.subr.bf16.mxu0 %v3991_v63 }
 0x50a   :  { %3623 = vmatmul.mubr.bf16.vlgmr.msra.gmra.mrb[144].mxu0 %v6188_v59 }
 0x50b   :  { %3640 = vmatpush1.bf16.xpose.msra.mxu0 %v3990_v21  ;;  %3630 = vmatprep.mubr.bf16.mxu0 %v2605_v28  ;;  %v6194_v28 = vld [vmem:[#allocation28_spill] sm:$0xff] }
 0x50c   :  { %3641 = vmatprep.subr.bf16.mxu0 %v4023_v37  ;;  %v6195_v51 = vpack.c.bf16 %v6193_v38, %v6194_v28 }
 0x512   :  { %3631 = vmatmul.mubr.bf16.gmra.mrb[148].mxu0 %v6189_v7 }
 0x513   :  { %3642 = vmatpush1.bf16.xpose.msra.mxu0 %v4022_v1  ;;  %3671 = vmatprep.mubr.bf16.mxu0 %v6192_v24 }
 0x514   :  { %3688 = vmatprep.subr.bf16.mxu0 %v3993_v27 }
 0x51a   :  { %3672 = vmatmul.mubr.bf16.vlgmr.msra.gmra.mrb[144].mxu0 %v6195_v51 }
 0x51b   :  { %3689 = vmatpush1.bf16.xpose.msra.mxu0 %v3992_v46  ;;  %3679 = vmatprep.mubr.bf16.mxu0 %v2609_v22  ;;  %v6201_v22 = vld [vmem:[#allocation31_spill] sm:$0xff] }
 0x51c   :  { %3690 = vmatprep.subr.bf16.mxu0 %v4025_v0  ;;  %v6202_v52 = vpack.c.bf16 %v6200_v57, %v6201_v22 }
 0x522   :  { %3680 = vmatmul.mubr.bf16.gmra.mrb[148].mxu0 %v6196_v30 }
 0x523   :  { %3691 = vmatpush1.bf16.xpose.msra.mxu0 %v4024_v61  ;;  %3720 = vmatprep.mubr.bf16.mxu0 %v6199_v20 }
 0x524   :  { %3737 = vmatprep.subr.bf16.mxu0 %v3995_v2 }
 0x52a   :  { %3721 = vmatmul.mubr.bf16.vlgmr.msra.gmra.mrb[144].mxu0 %v6202_v52 }
 0x52b   :  { %3738 = vmatpush1.bf16.xpose.msra.mxu0 %v3994_v14  ;;  %3728 = vmatprep.mubr.bf16.mxu0 %v6203_v54 }
 0x52c   :  { %3739 = vmatprep.subr.bf16.mxu0 %v4027_v62 }
 0x532   :  { %3729 = vmatmul.mubr.bf16.gmra.mrb[148].mxu0 %v6204_v4 }
 0x533   :  { %3740 = vmatpush1.bf16.xpose.msra.mxu0 %v4026_v13  ;;  %3769 = vmatprep.mubr.bf16.mxu0 %v6206_v18 }
 0x53a   :  { %3770 = vmatmul.mubr.bf16.vlgmr.msra.gmra.mrb[144].mxu0 %v6209_v47 }
 0x53b   :  { %3777 = vmatprep.mubr.bf16.mxu0 %v2617_v3 }
 0x542   :  { %3778 = vmatmul.mubr.bf16.gmra.mrb[148].mxu0 %v6210_v35 }
 0x60d   :  { %v3771_v25 = vpop.f32.mrb[144].mxu0 }
 0x60e   :  { %3786 = vst.msk [vmem:[#allocation8] sm:$0xff] %vm173_vm0, %v3771_v25  ;;  %v3773_v16 = vpop.f32.mrb[145].mxu0 }
 0x60f   :  { %v3774_v50 = vpop.f32.mrb[146].mxu0 }
 0x610   :  { %3787 = vst.msk [vmem:[#allocation8 + $0x8] sm:$0xff] %vm173_vm0, %v3774_v50  ;;  %v3776_v60 = vpop.f32.mrb[147].mxu0 }
 0x615   :  { %v3779_v56 = vpop.f32.mrb[148].mxu0 }
 0x616   :  { %3788 = vst.msk [vmem:[#allocation8 + $0x10] sm:$0xff] %vm173_vm0, %v3779_v56  ;;  %v3781_v8 = vpop.f32.mrb[149].mxu0 }
 0x617   :  { %v3782_v26 = vpop.f32.mrb[150].mxu0 }
 0x618   :  { %3789 = vst.msk [vmem:[#allocation8 + $0x18] sm:$0xff] %vm173_vm0, %v3782_v26  ;;  %v3784_v5 = vpop.f32.mrb[151].mxu0 }
 0x619   :  { %4269 = shalt.err (!%p4266_p0)
}
 0x61a   :  { %s4270_s18 = scalar_lea.hbm %s5927_s8, 512 }
 0x61b   :  { %p4271_p1 = scmp.ne.s32.totalorder %s5927_s8, %s4270_s18  ;;  %p4274_p2 = scmp.lt.u32.totalorder %s4270_s18, %s5927_s8 }
 0x61d   :  { %p4276_p3 = pnand %p4274_p2, %p4271_p1 }
 0x61f   :  { %4279 = shalt.err (!%p4276_p3)
}
 0x620   :  { %s4297_s23 = smov 8  }
 0x621   :  { %3801 = dma.vmem_to_hbm [thread:$0]  %s3796_s14, 512, %s5927_s8, [#allocation4], %s4294_s20, %s4294_s20, %s4297_s23  }
 0x622   :  { %4284 = dma.done.wait [#allocation4], 512  }
 0x623   :  { %4285 = vsyncadd [#allocation4], 4294966784 }
 0x624   :  { %3805 = vsyncpa [#allocation3], 1 }
 0x625   :  { %3806 = vsyncpa [#allocation6], 1 }
 0x626   :  { %3807 = vsyncpa [#allocation4], 1 }

</bundles_post_ra>
